<compile_context>
chip_gen: v7x
topology: tpu7x:2x2x1
jax: 0.10.0
libtpu: 0.0.40
codegen_flags: <defaults>
</compile_context>

<pallas_src>
import functools

import jax
import jax.numpy as jnp
from jax.experimental import pallas as pl
from jax.experimental.pallas import tpu as pltpu

BN_EPS = 1e-5
LANE = 128
N_ALIGN = 128  # 256 would exactly fill v6e/v7x's 256-wide MXU; 128 is lane-dense


def _round_up(x, m):
    return ((x + m - 1) // m) * m


def _vmem_limit_bytes():
    """Generation-aware scoped-VMEM limit (defaults are 16/32 MiB, far below HW)."""
    try:
        cap = pltpu.get_tpu_info().vmem_capacity_bytes
    except Exception:
        cap = 128 * 1024 * 1024
    # Leave ~1/8 headroom for compiler-internal scratch:
    # v5e/v6e -> ~112 MiB, v7x -> ~56 MiB.
    return int(cap - cap // 8)


def _resident_vmem_estimate(n_pad, g, fp, num_layers):
    """Rough VMEM budget of the fused resident-A design (bytes)."""
    del num_layers
    a = 2 * n_pad * n_pad                  # bf16 A+I, single-buffered
    p = 2 * g * n_pad                      # bf16 P
    h0 = 2 * n_pad * fp                    # bf16 h0
    hbf = 2 * n_pad * fp                   # bf16 carried-h scratch
    hout = 4 * n_pad * fp                  # f32 node-feature output block
    w = 2 * 2 * 2 * fp * fp                # double-buffered (2, fp, fp) bf16
    bn = 2 * 4 * 4 * fp                    # double-buffered (4, fp) f32
    pool = 2 * 4 * g * fp                  # double-buffered (g, fp) f32
    mask = 4 * n_pad
    temps = 4 * 4 * n_pad * fp             # live f32 temporaries (x, z1, z2, hn)
    return a + p + h0 + hbf + hout + w + bn + pool + mask + temps


def _encoder_kernel(a_ref, p_ref, mask_ref, h0_ref, w_ref, bn_ref,
                    hout_ref, pool_ref, hbf_ref, *, inv_n, apply_row_mask):
    """One grid step == one GIN layer. A+I/P/mask/h stay resident across steps."""
    layer = pl.program_id(0)

    # Initialise the carried bf16 node-feature state from the padded inputs.
    @pl.when(layer == 0)
    def _():
        hbf_ref[...] = h0_ref[...]

    def _mask(v):
        # Re-zero padded node rows (needed so the next BN reduction / padded
        # rows stay exactly zero); skipped entirely when N is already aligned.
        return v * mask_ref[...] if apply_row_mask else v

    # GIN sum aggregation with the self-term folded into A (eps = 0):
    #   x = (A + I) @ h      (entries of A + I are 0/1 -> exact in bf16)
    x = jnp.dot(a_ref[...], hbf_ref[...], preferred_element_type=jnp.float32)

    bn = bn_ref[...]                    # (4, fp): [gamma1; beta1; gamma2; beta2]
    g1, b1, g2, b2 = bn[0:1], bn[1:2], bn[2:3], bn[3:4]

    # --- MLP linear 1 (no bias) + inner BatchNorm (training stats) + ReLU ---
    z1 = jnp.dot(x.astype(jnp.bfloat16), w_ref[0],
                 preferred_element_type=jnp.float32)
    s1 = jnp.sum(z1, axis=0, keepdims=True)
    q1 = jnp.sum(z1 * z1, axis=0, keepdims=True)
    m1 = s1 * inv_n
    v1 = jnp.maximum(q1 * inv_n - m1 * m1, 0.0)
    sc1 = g1 * jax.lax.rsqrt(v1 + BN_EPS)
    sh1 = b1 - m1 * sc1
    z1 = _mask(jnp.maximum(z1 * sc1 + sh1, 0.0))

    # --- MLP linear 2 (no bias) + outer BatchNorm(hidden) + ReLU ---
    z2 = jnp.dot(z1.astype(jnp.bfloat16), w_ref[1],
                 preferred_element_type=jnp.float32)
    s2 = jnp.sum(z2, axis=0, keepdims=True)
    q2 = jnp.sum(z2 * z2, axis=0, keepdims=True)
    m2 = s2 * inv_n
    v2 = jnp.maximum(q2 * inv_n - m2 * m2, 0.0)
    sc2 = g2 * jax.lax.rsqrt(v2 + BN_EPS)
    sh2 = b2 - m2 * sc2
    hn = _mask(jnp.maximum(z2 * sc2 + sh2, 0.0))

    # Carry the new node features: one bf16 cast reused by this layer's P@h
    # pooling and the next layer's (A+I)@h aggregation.
    hn_bf = hn.astype(jnp.bfloat16)
    hbf_ref[...] = hn_bf
    hout_ref[...] = hn
    pool_ref[...] = jnp.dot(p_ref[...], hn_bf,
                            preferred_element_type=jnp.float32)


def init_encoder1_params(key, in_hidden, out_hidden, hidden, num_layers):
    """Deterministic parameter init mirroring Encoder1.__init__ shapes (f32)."""
    params = []
    for layer in range(num_layers):
        din = in_hidden if layer == 0 else hidden
        key, k1, k2 = jax.random.split(key, 3)
        # nn.Linear(din, out_hidden, bias=False).weight is (out_hidden, din);
        # stored transposed (din, out_hidden) so the kernel computes x @ W1.
        w1 = (jax.random.normal(k1, (din, out_hidden), jnp.float32)
              * (1.0 / jnp.sqrt(din)))
        w2 = (jax.random.normal(k2, (out_hidden, hidden), jnp.float32)
              * (1.0 / jnp.sqrt(out_hidden)))
        # BatchNorm affine params (PyTorch init: weight=1, bias=0).
        params.append(dict(
            w1=w1, w2=w2,
            g1=jnp.ones((out_hidden,), jnp.float32),
            b1=jnp.zeros((out_hidden,), jnp.float32),
            g2=jnp.ones((hidden,), jnp.float32),
            b2=jnp.zeros((hidden,), jnp.float32),
        ))
    return params


def _pack_params(params, fp):
    """Merge per-layer weights/BN params into two lane-padded slabs.

    Padded gamma/beta are zero, so padded feature columns stay exactly zero
    through BN + ReLU on every layer.
    """
    num_layers = len(params)
    w = jnp.zeros((num_layers, 2, fp, fp), jnp.bfloat16)
    bn = jnp.zeros((num_layers, 4, fp), jnp.float32)
    for l, lp in enumerate(params):
        din, dmid = lp["w1"].shape
        _, dout = lp["w2"].shape
        w = w.at[l, 0, :din, :dmid].set(lp["w1"].astype(jnp.bfloat16))
        w = w.at[l, 1, :dmid, :dout].set(lp["w2"].astype(jnp.bfloat16))
        bn = bn.at[l, 0, :dmid].set(lp["g1"])
        bn = bn.at[l, 1, :dmid].set(lp["b1"])
        bn = bn.at[l, 2, :dout].set(lp["g2"])
        bn = bn.at[l, 3, :dout].set(lp["b2"])
    return w, bn


def encoder1_forward(a, p, h0, params, *, out_hidden, hidden):
    """Matches Encoder1.forward: returns (h_final, concat(pooled_per_layer, axis=1))."""
    n = a.shape[0]
    g = p.shape[0]
    num_layers = len(params)
    assert n != 1, "h has a single node; batch_norm over nodes is undefined"

    in_hidden = h0.shape[1]
    fp = _round_up(max(in_hidden, out_hidden, hidden, LANE), LANE)
    n_pad = _round_up(n, N_ALIGN)

    # Fold the GIN self-term into the adjacency (eps = 0) and zero-pad the node
    # axis; padded rows/cols of A+I and padded cols of P are zero.
    a_eye = (a + jnp.eye(n, dtype=a.dtype)).astype(jnp.bfloat16)
    a_pad = jnp.zeros((n_pad, n_pad), jnp.bfloat16).at[:n, :n].set(a_eye)
    p_pad = jnp.zeros((g, n_pad), jnp.bfloat16).at[:, :n].set(p.astype(jnp.bfloat16))
    h0_pad = jnp.zeros((n_pad, fp), jnp.bfloat16).at[:n, :in_hidden].set(
        h0.astype(jnp.bfloat16))
    row_mask = jnp.zeros((n_pad, 1), jnp.float32).at[:n].set(1.0)

    w, bn = _pack_params(params, fp)

    vmem_limit = _vmem_limit_bytes()
    if _resident_vmem_estimate(n_pad, g, fp, num_layers) > vmem_limit:
        # TODO(synk): row-tiled streaming over A with two-phase BatchNorm once
        # resident A no longer fits (v7x ~N>4k, v5e/v6e ~N>6-8k); same
        # restructuring enables dual-TensorCore row parallelism on v7x.
        raise NotImplementedError(
            "graph too large for the resident-A fused kernel; streaming path "
            "not implemented")

    kernel = functools.partial(_encoder_kernel, inv_n=1.0 / n,
                               apply_row_mask=(n_pad != n))

    def resident(shape):
        # Whole-array block, constant block index, SINGLE-buffered: fetched
        # from HBM exactly once and kept resident in VMEM across all layers.
        return pl.BlockSpec(tuple(shape), lambda l, _n=len(shape): (0,) * _n,
                            pipeline_mode=pl.Buffered(1))

    def per_layer(shape):
        # Leading (squeezed) layer axis streamed per grid step (double-buffered).
        return pl.BlockSpec((None,) + tuple(shape),
                            lambda l, _n=len(shape): (l,) + (0,) * _n)

    h_out, pools = pl.pallas_call(
        kernel,
        out_shape=(
            jax.ShapeDtypeStruct((n_pad, fp), jnp.float32),
            jax.ShapeDtypeStruct((num_layers, g, fp), jnp.float32),
        ),
        grid=(num_layers,),
        in_specs=[
            resident((n_pad, n_pad)),   # A + I   (bf16, resident)
            resident((g, n_pad)),       # P       (bf16, resident)
            resident((n_pad, 1)),       # row mask (f32, resident)
            resident((n_pad, fp)),      # h0      (bf16, resident, read at layer 0)
            per_layer((2, fp, fp)),     # [W1; W2] for layer l (bf16)
            per_layer((4, fp)),         # [g1; b1; g2; b2] for layer l (f32)
        ],
        out_specs=(
            pl.BlockSpec((n_pad, fp), lambda l: (0, 0)),   # node features (resident)
            per_layer((g, fp)),                            # per-layer pooled readout
        ),
        scratch_shapes=[pltpu.VMEM((n_pad, fp), jnp.bfloat16)],  # carried bf16 h
        compiler_params=pltpu.CompilerParams(
            dimension_semantics=("arbitrary",),
            vmem_limit_bytes=vmem_limit),
    )(a_pad, p_pad, row_mask, h0_pad, w, bn)

    h_final = h_out[:n, :hidden]
    pooled = jnp.transpose(pools[:, :, :hidden], (1, 0, 2))   # (G, L, hidden)
    pooled_cat = pooled.reshape(g, num_layers * hidden)
    return h_final, pooled_cat


if __name__ == "__main__":
    # Small deterministic example: 2 graphs of 8 nodes each (N = 16 total).
    key = jax.random.PRNGKey(0)
    N, G = 16, 2
    in_hidden, out_hidden, hidden, num_layers = 8, 32, 16, 2

    key, ka, kh = jax.random.split(key, 3)
    # Random symmetric adjacency without self loops, dense float32.
    adj_bits = (jax.random.uniform(ka, (N, N)) < 0.3).astype(jnp.float32)
    a = jnp.triu(adj_bits, k=1)
    a = a + a.T

    # Graph membership (SumPooling): first 8 nodes -> graph 0, last 8 -> graph 1.
    node_graph = jnp.concatenate([jnp.zeros((N // 2,), jnp.int32),
                                  jnp.ones((N // 2,), jnp.int32)])
    p = (node_graph[None, :] == jnp.arange(G)[:, None]).astype(jnp.float32)

    h0 = jax.random.normal(kh, (N, in_hidden), jnp.float32)

    params = init_encoder1_params(jax.random.PRNGKey(42),
                                  in_hidden, out_hidden, hidden, num_layers)

    h_final, pooled_cat = encoder1_forward(a, p, h0, params,
                                           out_hidden=out_hidden, hidden=hidden)
    jax.block_until_ready((h_final, pooled_cat))

    assert h_final.shape == (N, hidden)
    assert pooled_cat.shape == (G, hidden * num_layers)
    assert bool(jnp.all(jnp.isfinite(h_final)))
    assert bool(jnp.all(jnp.isfinite(pooled_cat)))
    print("KERNEL_OK")
</pallas_src>

<mosaic_0001>
module attributes {stable_mosaic.version = 11 : i64} {
  func.func @_encoder_kernel(%arg0: i32, %arg1: memref<128x128xbf16, #tpu.memory_space<vmem>>, %arg2: memref<2x128xbf16, #tpu.memory_space<vmem>>, %arg3: memref<128x1xf32, #tpu.memory_space<vmem>>, %arg4: memref<128x128xbf16, #tpu.memory_space<vmem>>, %arg5: memref<1x2x128x128xbf16, #tpu.memory_space<vmem>>, %arg6: memref<1x4x128xf32, #tpu.memory_space<vmem>>, %arg7: memref<128x128xf32, #tpu.memory_space<vmem>>, %arg8: memref<1x2x128xf32, #tpu.memory_space<vmem>>, %arg9: memref<128x128xbf16, #tpu.memory_space<vmem>>) attributes {dimension_semantics = [#tpu.dimension_semantics<arbitrary>], iteration_bounds = array<i64: 2>, scalar_prefetch = 0 : i64, scratch_operands = 1 : i64, tpu.core_type = #tpu.core_type<tc>, window_params = [{pipeline_mode = #tpu.pipeline_mode<synchronous>, transform_indices = @transform_0, window_bounds = array<i64: 128, 128>}, {pipeline_mode = #tpu.pipeline_mode<synchronous>, transform_indices = @transform_1, window_bounds = array<i64: 2, 128>}, {pipeline_mode = #tpu.pipeline_mode<synchronous>, transform_indices = @transform_2, window_bounds = array<i64: 128, 1>}, {pipeline_mode = #tpu.pipeline_mode<synchronous>, transform_indices = @transform_3, window_bounds = array<i64: 128, 128>}, {transform_indices = @transform_4, window_bounds = array<i64: 1, 2, 128, 128>}, {transform_indices = @transform_5, window_bounds = array<i64: 1, 4, 128>}, {pipeline_mode = #tpu.pipeline_mode<synchronous>, transform_indices = @transform_6, window_bounds = array<i64: 128, 128>}, {transform_indices = @transform_7, window_bounds = array<i64: 1, 2, 128>}]} {
    %c0_i32 = arith.constant 0 : i32
    %0 = arith.cmpi eq, %arg0, %c0_i32 : i32
    %1 = arith.extui %0 : i1 to i32
    %c0_i32_0 = arith.constant 0 : i32
    %2 = arith.cmpi ne, %1, %c0_i32_0 : i32
    scf.if %2 {
      %c0_44 = arith.constant 0 : index
      %c0_45 = arith.constant 0 : index
      %84 = vector.load %arg4[%c0_44, %c0_45] : memref<128x128xbf16, #tpu.memory_space<vmem>>, vector<128x128xbf16>
      %c0_46 = arith.constant 0 : index
      %c0_47 = arith.constant 0 : index
      %85 = vector.load %arg9[%c0_46, %c0_47] : memref<128x128xbf16, #tpu.memory_space<vmem>>, vector<128x128xbf16>
      tpu.vector_store %arg9[%c0_46, %c0_47], %84 {strides = array<i32>} : memref<128x128xbf16, #tpu.memory_space<vmem>>, vector<128x128xbf16>,
    } else {
    }
    %c0 = arith.constant 0 : index
    %c0_1 = arith.constant 0 : index
    %3 = vector.load %arg1[%c0, %c0_1] : memref<128x128xbf16, #tpu.memory_space<vmem>>, vector<128x128xbf16>
    %c0_2 = arith.constant 0 : index
    %c0_3 = arith.constant 0 : index
    %4 = vector.load %arg9[%c0_2, %c0_3] : memref<128x128xbf16, #tpu.memory_space<vmem>>, vector<128x128xbf16>
    %cst = arith.constant dense<0.000000e+00> : vector<128x128xf32>
    %5 = tpu.matmul %3, %4, %cst {dimension_numbers = #tpu.dot_dimension_numbers<[1], [0], [0], [1], [0, 0, 1, 1], [], []>} : vector<128x128xbf16>, vector<128x128xbf16>, vector<128x128xf32> -> vector<128x128xf32>
    %c0_4 = arith.constant 0 : index
    %c0_5 = arith.constant 0 : index
    %c0_6 = arith.constant 0 : index
    %6 = vector.load %arg6[%c0_4, %c0_5, %c0_6] : memref<1x4x128xf32, #tpu.memory_space<vmem>>, vector<1x4x128xf32>
    %7 = vector.shape_cast %6 : vector<1x4x128xf32> to vector<4x128xf32>
    %8 = vector.extract_strided_slice %7 {offsets = [0, 0], sizes = [1, 128], strides = [1, 1]} : vector<4x128xf32> to vector<1x128xf32>
    %9 = vector.extract_strided_slice %7 {offsets = [1, 0], sizes = [1, 128], strides = [1, 1]} : vector<4x128xf32> to vector<1x128xf32>
    %10 = vector.extract_strided_slice %7 {offsets = [2, 0], sizes = [1, 128], strides = [1, 1]} : vector<4x128xf32> to vector<1x128xf32>
    %11 = vector.extract_strided_slice %7 {offsets = [3, 0], sizes = [1, 128], strides = [1, 1]} : vector<4x128xf32> to vector<1x128xf32>
    %12 = arith.truncf %5 : vector<128x128xf32> to vector<128x128xbf16>
    %c0_7 = arith.constant 0 : index
    %c0_8 = arith.constant 0 : index
    %c0_9 = arith.constant 0 : index
    %c0_10 = arith.constant 0 : index
    %13 = vector.load %arg5[%c0_7, %c0_8, %c0_9, %c0_10] : memref<1x2x128x128xbf16, #tpu.memory_space<vmem>>, vector<1x1x128x128xbf16>
    %14 = vector.shape_cast %13 : vector<1x1x128x128xbf16> to vector<128x128xbf16>
    %cst_11 = arith.constant dense<0.000000e+00> : vector<128x128xf32>
    %15 = tpu.matmul %12, %14, %cst_11 {dimension_numbers = #tpu.dot_dimension_numbers<[1], [0], [0], [1], [0, 0, 1, 1], [], []>} : vector<128x128xbf16>, vector<128x128xbf16>, vector<128x128xf32> -> vector<128x128xf32>
    %cst_12 = arith.constant dense<0.000000e+00> : vector<128xf32>
    %16 = vector.multi_reduction <add>, %15, %cst_12 [0] : vector<128x128xf32> to vector<128xf32>
    %17 = vector.shape_cast %16 : vector<128xf32> to vector<1x128xf32>
    %18 = arith.mulf %15, %15 : vector<128x128xf32>
    %cst_13 = arith.constant dense<0.000000e+00> : vector<128xf32>
    %19 = vector.multi_reduction <add>, %18, %cst_13 [0] : vector<128x128xf32> to vector<128xf32>
    %20 = vector.shape_cast %19 : vector<128xf32> to vector<1x128xf32>
    %cst_14 = arith.constant 6.250000e-02 : f32
    %21 = vector.broadcast %cst_14 : f32 to vector<1x128xf32>
    %22 = arith.mulf %17, %21 : vector<1x128xf32>
    %cst_15 = arith.constant 6.250000e-02 : f32
    %23 = vector.broadcast %cst_15 : f32 to vector<1x128xf32>
    %24 = arith.mulf %20, %23 : vector<1x128xf32>
    %25 = arith.mulf %22, %22 : vector<1x128xf32>
    %26 = arith.subf %24, %25 : vector<1x128xf32>
    %cst_16 = arith.constant 0.000000e+00 : f32
    %27 = vector.broadcast %cst_16 : f32 to vector<1x128xf32>
    %28 = arith.maximumf %26, %27 : vector<1x128xf32>
    %cst_17 = arith.constant 9.99999974E-6 : f32
    %29 = vector.broadcast %cst_17 : f32 to vector<1x128xf32>
    %30 = arith.addf %28, %29 : vector<1x128xf32>
    %31 = math.rsqrt %30 : vector<1x128xf32>
    %32 = arith.mulf %8, %31 : vector<1x128xf32>
    %33 = arith.mulf %22, %32 : vector<1x128xf32>
    %34 = arith.subf %9, %33 : vector<1x128xf32>
    %35 = vector.broadcast %32 : vector<1x128xf32> to vector<128x128xf32>
    %36 = arith.mulf %15, %35 : vector<128x128xf32>
    %37 = vector.broadcast %34 : vector<1x128xf32> to vector<128x128xf32>
    %38 = arith.addf %36, %37 : vector<128x128xf32>
    %cst_18 = arith.constant 0.000000e+00 : f32
    %39 = vector.broadcast %cst_18 : f32 to vector<128x128xf32>
    %40 = arith.maximumf %38, %39 : vector<128x128xf32>
    %c0_19 = arith.constant 0 : index
    %c0_20 = arith.constant 0 : index
    %41 = vector.load %arg3[%c0_19, %c0_20] : memref<128x1xf32, #tpu.memory_space<vmem>>, vector<128x1xf32>
    %42 = vector.broadcast %41 : vector<128x1xf32> to vector<128x128xf32>
    %43 = arith.mulf %40, %42 : vector<128x128xf32>
    %44 = arith.truncf %43 : vector<128x128xf32> to vector<128x128xbf16>
    %c0_21 = arith.constant 0 : index
    %c1 = arith.constant 1 : index
    %c0_22 = arith.constant 0 : index
    %c0_23 = arith.constant 0 : index
    %45 = vector.load %arg5[%c0_21, %c1, %c0_22, %c0_23] : memref<1x2x128x128xbf16, #tpu.memory_space<vmem>>, vector<1x1x128x128xbf16>
    %46 = vector.shape_cast %45 : vector<1x1x128x128xbf16> to vector<128x128xbf16>
    %cst_24 = arith.constant dense<0.000000e+00> : vector<128x128xf32>
    %47 = tpu.matmul %44, %46, %cst_24 {dimension_numbers = #tpu.dot_dimension_numbers<[1], [0], [0], [1], [0, 0, 1, 1], [], []>} : vector<128x128xbf16>, vector<128x128xbf16>, vector<128x128xf32> -> vector<128x128xf32>
    %cst_25 = arith.constant dense<0.000000e+00> : vector<128xf32>
    %48 = vector.multi_reduction <add>, %47, %cst_25 [0] : vector<128x128xf32> to vector<128xf32>
    %49 = vector.shape_cast %48 : vector<128xf32> to vector<1x128xf32>
    %50 = arith.mulf %47, %47 : vector<128x128xf32>
    %cst_26 = arith.constant dense<0.000000e+00> : vector<128xf32>
    %51 = vector.multi_reduction <add>, %50, %cst_26 [0] : vector<128x128xf32> to vector<128xf32>
    %52 = vector.shape_cast %51 : vector<128xf32> to vector<1x128xf32>
    %cst_27 = arith.constant 6.250000e-02 : f32
    %53 = vector.broadcast %cst_27 : f32 to vector<1x128xf32>
    %54 = arith.mulf %49, %53 : vector<1x128xf32>
    %cst_28 = arith.constant 6.250000e-02 : f32
    %55 = vector.broadcast %cst_28 : f32 to vector<1x128xf32>
    %56 = arith.mulf %52, %55 : vector<1x128xf32>
    %57 = arith.mulf %54, %54 : vector<1x128xf32>
    %58 = arith.subf %56, %57 : vector<1x128xf32>
    %cst_29 = arith.constant 0.000000e+00 : f32
    %59 = vector.broadcast %cst_29 : f32 to vector<1x128xf32>
    %60 = arith.maximumf %58, %59 : vector<1x128xf32>
    %cst_30 = arith.constant 9.99999974E-6 : f32
    %61 = vector.broadcast %cst_30 : f32 to vector<1x128xf32>
    %62 = arith.addf %60, %61 : vector<1x128xf32>
    %63 = math.rsqrt %62 : vector<1x128xf32>
    %64 = arith.mulf %10, %63 : vector<1x128xf32>
    %65 = arith.mulf %54, %64 : vector<1x128xf32>
    %66 = arith.subf %11, %65 : vector<1x128xf32>
    %67 = vector.broadcast %64 : vector<1x128xf32> to vector<128x128xf32>
    %68 = arith.mulf %47, %67 : vector<128x128xf32>
    %69 = vector.broadcast %66 : vector<1x128xf32> to vector<128x128xf32>
    %70 = arith.addf %68, %69 : vector<128x128xf32>
    %cst_31 = arith.constant 0.000000e+00 : f32
    %71 = vector.broadcast %cst_31 : f32 to vector<128x128xf32>
    %72 = arith.maximumf %70, %71 : vector<128x128xf32>
    %c0_32 = arith.constant 0 : index
    %c0_33 = arith.constant 0 : index
    %73 = vector.load %arg3[%c0_32, %c0_33] : memref<128x1xf32, #tpu.memory_space<vmem>>, vector<128x1xf32>
    %74 = vector.broadcast %73 : vector<128x1xf32> to vector<128x128xf32>
    %75 = arith.mulf %72, %74 : vector<128x128xf32>
    %76 = arith.truncf %75 : vector<128x128xf32> to vector<128x128xbf16>
    %c0_34 = arith.constant 0 : index
    %c0_35 = arith.constant 0 : index
    %77 = vector.load %arg9[%c0_34, %c0_35] : memref<128x128xbf16, #tpu.memory_space<vmem>>, vector<128x128xbf16>
    tpu.vector_store %arg9[%c0_34, %c0_35], %76 {strides = array<i32>} : memref<128x128xbf16, #tpu.memory_space<vmem>>, vector<128x128xbf16>,
    %c0_36 = arith.constant 0 : index
    %c0_37 = arith.constant 0 : index
    %78 = vector.load %arg7[%c0_36, %c0_37] : memref<128x128xf32, #tpu.memory_space<vmem>>, vector<128x128xf32>
    tpu.vector_store %arg7[%c0_36, %c0_37], %75 {strides = array<i32>} : memref<128x128xf32, #tpu.memory_space<vmem>>, vector<128x128xf32>,
    %c0_38 = arith.constant 0 : index
    %c0_39 = arith.constant 0 : index
    %79 = vector.load %arg2[%c0_38, %c0_39] : memref<2x128xbf16, #tpu.memory_space<vmem>>, vector<2x128xbf16>
    %cst_40 = arith.constant dense<0.000000e+00> : vector<2x128xf32>
    %80 = tpu.matmul %79, %76, %cst_40 {dimension_numbers = #tpu.dot_dimension_numbers<[1], [0], [0], [1], [0, 0, 1, 1], [], []>} : vector<2x128xbf16>, vector<128x128xbf16>, vector<2x128xf32> -> vector<2x128xf32>
    %c0_41 = arith.constant 0 : index
    %c0_42 = arith.constant 0 : index
    %c0_43 = arith.constant 0 : index
    %81 = vector.load %arg8[%c0_41, %c0_42, %c0_43] : memref<1x2x128xf32, #tpu.memory_space<vmem>>, vector<1x2x128xf32>
    %82 = vector.shape_cast %81 : vector<1x2x128xf32> to vector<2x128xf32>
    %83 = vector.shape_cast %80 : vector<2x128xf32> to vector<1x2x128xf32>
    tpu.vector_store %arg8[%c0_41, %c0_42, %c0_43], %83 {strides = array<i32>} : memref<1x2x128xf32, #tpu.memory_space<vmem>>, vector<1x2x128xf32>,
    return
  }
  func.func @transform_0(%arg0: i32) -> (i32, i32) {
    %c0_i32 = arith.constant 0 : i32
    %c0_i32_0 = arith.constant 0 : i32
    %c0_i32_1 = arith.constant 0 : i32
    return %c0_i32, %c0_i32_0 : i32, i32
  }
  func.func @transform_1(%arg0: i32) -> (i32, i32) {
    %c0_i32 = arith.constant 0 : i32
    %c0_i32_0 = arith.constant 0 : i32
    %c0_i32_1 = arith.constant 0 : i32
    return %c0_i32, %c0_i32_0 : i32, i32
  }
  func.func @transform_2(%arg0: i32) -> (i32, i32) {
    %c0_i32 = arith.constant 0 : i32
    %c0_i32_0 = arith.constant 0 : i32
    %c0_i32_1 = arith.constant 0 : i32
    return %c0_i32, %c0_i32_0 : i32, i32
  }
  func.func @transform_3(%arg0: i32) -> (i32, i32) {
    %c0_i32 = arith.constant 0 : i32
    %c0_i32_0 = arith.constant 0 : i32
    %c0_i32_1 = arith.constant 0 : i32
    return %c0_i32, %c0_i32_0 : i32, i32
  }
  func.func @transform_4(%arg0: i32) -> (i32, i32, i32, i32) {
    %c0_i32 = arith.constant 0 : i32
    %c0_i32_0 = arith.constant 0 : i32
    %c0_i32_1 = arith.constant 0 : i32
    %c0_i32_2 = arith.constant 0 : i32
    return %arg0, %c0_i32, %c0_i32_0, %c0_i32_1 : i32, i32, i32, i32
  }
  func.func @transform_5(%arg0: i32) -> (i32, i32, i32) {
    %c0_i32 = arith.constant 0 : i32
    %c0_i32_0 = arith.constant 0 : i32
    %c0_i32_1 = arith.constant 0 : i32
    return %arg0, %c0_i32, %c0_i32_0 : i32, i32, i32
  }
  func.func @transform_6(%arg0: i32) -> (i32, i32) {
    %c0_i32 = arith.constant 0 : i32
    %c0_i32_0 = arith.constant 0 : i32
    %c0_i32_1 = arith.constant 0 : i32
    return %c0_i32, %c0_i32_0 : i32, i32
  }
  func.func @transform_7(%arg0: i32) -> (i32, i32, i32) {
    %c0_i32 = arith.constant 0 : i32
    %c0_i32_0 = arith.constant 0 : i32
    %c0_i32_1 = arith.constant 0 : i32
    return %arg0, %c0_i32, %c0_i32_0 : i32, i32, i32
  }
}

</mosaic_0001>

<bundles_post_ra>
// kernel: tpu_custom_call.1
= control target key start
LH: loop header
LB: loop body
LE: loop exit
PB: predicated region body
PF: predicated region fallthrough
CT: control target
= control target key end

     0   :  { %s2940_s0 = inlined_call_operand.hbm [shape: bf16[128,128], index: 0, kind: input, shape index: {}]   ;;  %s2941_s1 = inlined_call_operand.hbm [shape: bf16[2,128], index: 1, kind: input, shape index: {}]   ;;  %s2942_s2 = inlined_call_operand.hbm [shape: f32[128,1], index: 2, kind: input, shape index: {}]   ;;  %s2943_s3 = inlined_call_operand.hbm [shape: bf16[128,128], index: 3, kind: input, shape index: {}]   ;;  %s2944_s4 = inlined_call_operand.hbm [shape: bf16[2,2,128,128], index: 4, kind: input, shape index: {}]   ;;  %s2945_s5 = inlined_call_operand.hbm [shape: f32[2,4,128], index: 5, kind: input, shape index: {}]   ;;  %s2946_s6 = inlined_call_operand.hbm [shape: f32[128,128], index: 6, kind: output, shape index: {0}]   ;;  %s2947_s7 = inlined_call_operand.hbm [shape: f32[2,2,128], index: 7, kind: output, shape index: {1}]  }
   0x1   :  { %2970 = sst [smem:[#allocation27_spill]] %s2940_s0 }
   0x2   :  { %2971 = sst [smem:[#allocation28_spill]] %s2941_s1 }
   0x3   :  { %2972 = sst [smem:[#allocation29_spill]] %s2944_s4 }
   0x4   :  { %2973 = sst [smem:[#allocation30_spill]] %s2946_s6 }
   0x5   :  { %2974 = sst [smem:[#allocation31_spill]] %s2947_s7 }
   0x6   :  { %13 = vsyncpa [#allocation4], 0 }
   0x7   :  { %14 = vsyncpa [#allocation7], 0 }
   0x8   :  { %15 = vsyncpa [#allocation10], 0 }
   0x9   :  { %16 = vsyncpa [#allocation5], 0 }
   0xa   :  { %17 = vsyncpa [#allocation15], 0 }
   0xb   :  { %19 = vsyncpa [#allocation15 + $0x1], 0  ;;  %s2328_s24 = smov 0   ;;  %s2330_s25 = smov 0  }
   0xc   :  { %s2332_s26 = smov 0   ;;  %s2334_s27 = smov 0  }
   0xd LB: > { %2975 = sst [smem:[#allocation22_spill]] %s2257_s24  ;;  %s2349_s28 = sadd.s32 4294967295, %s2269_s27   ;;  %s2269_s27 = sphi %s2334_s27, %s3020_s27   ;;  %s2265_s26 = sphi %s2332_s26, %s3024_s26   ;;  %s2261_s25 = sphi %s2330_s25, %s3023_s25   ;;  %s2257_s24 = sphi %s2328_s24, %s3022_s24  }
   0xe   : > { %s1594_s29 = sadd.s32 4294967294, %s2269_s27   ;;  %p129_p0 = scmp.ne.s32.totalorder %s2261_s25, %s2257_s24 }
   0xf   : > { %p2948_p1 = scmp.eq.s32.totalorder %s2349_s28, 0  ;;  %p206_p3 = scmp.eq.s32.totalorder %s1594_s29, 1 }
  0x10   : > { %p1595_p5 = scmp.ge.s32.totalorder %s2269_s27, 1  ;;  %p213_p7 = scmp.lt.s32.totalorder %s2269_s27, 3 }
  0x11   : > { %p2358_p4 = por %p2948_p1, %p129_p0  ;;  %p2363_p6 = por %p206_p3, %p129_p0 }
  0x12   : > { %p2369_p9 = pnand %p1595_p5, %p213_p7  ;;  %s2271_s10 = smov [#allocation3]  }
  0x13   : > { %s2976_s30 = scalar_select %p2358_p4, 1, 0 }
  0x14   : > { %s2977_s8 = scalar_select %p2363_p6, 1, 0 }
  0x15   : > { %s2979_s9 = scalar_select %p2369_p9, 1, 0 }
  0x16   : > { %2978 = sst [smem:[#allocation23_spill]] %s2977_s8  ;;  %s225_s11 = sshll.u32 %s2271_s10, 4  ;;  %s2373_s11 = int_to_ptr.vmem [resolvable:$true] %s225_s11 }
  0x17   : > { %p1869_p10 = pneg %p2369_p9  ;;  %s2272_s13 = smov [#allocation6]  }
  0x18   : > { %s239_s14 = sshll.u32 %s2272_s13, 4  ;;  %s2981_s0 = sld [smem:[#allocation27_spill]]  ;;  %s2384_s14 = int_to_ptr.vmem [resolvable:$true] %s239_s14 }
  0x19   : > { %p2380_p12 = pnand %p1869_p10, %p2948_p1 }
  0x1b   : > { %s2980_s12 = scalar_select %p2380_p12, 1, 0 }
  0x1c   : > { %p2394_p0 = pneg %p2380_p12 }
  0x1e   : > { %s1989_s17 = scalar_lea.hbm %s2981_s0, 1024 }
  0x1f   : > { %p1990_p13 = scmp.ne.s32.totalorder %s2981_s0, %s1989_s17  ;;  %p1996_p7 = scmp.lt.u32.totalorder %s1989_s17, %s2981_s0 }
  0x21   : > { %p1992_p3 = pnand %p2394_p0, %p1990_p13 }
  0x23   : > { %p1993_p5 = pneg %p1992_p3 }
  0x25   : > { %p1998_p10 = pnand %p1996_p7, %p1993_p5 }
  0x27   : > { %2001 = shalt.err (!%p1998_p10)
}
  0x28   : > { %s2002_s23 = scalar_lea.vmem %s2373_s11, 1024  ;;  %p2010_p2 = scmp.lt.s32.totalorder %s2373_s11, %s2373_s11 }
  0x29   : > { %p2003_p11 = scmp.ne.s32.totalorder %s2373_s11, %s2002_s23  ;;  %p2011_p6 = scmp.lt.s32.totalorder %s2002_s23, %s2002_s23 }
  0x2b   : > { %p2005_p8 = pnand %p2003_p11, %p2394_p0  ;;  %p2012_p13 = por %p2011_p6, %p2010_p2 }
  0x2d   : > { %p2006_p1 = pneg %p2005_p8 }
  0x2f   : > { %p2013_p3 = pnand %p2012_p13, %p2006_p1 }
  0x31   : > { %2016 = shalt.err (!%p2013_p3)
}
  0x32   : > { %s2949_s29 = smov 64   ;;  %s2951_s10 = smov 4  }
  0x33   : > { %1872 = dma.hbm_to_vmem [thread:$0]  (!%p2380_p12), %s2981_s0, 1024, %s2373_s11, [#allocation4], %s2949_s29, %s2949_s29, %s2951_s10  }
  0x34   : > { %s2983_s1 = sld [smem:[#allocation28_spill]] }
  0x3a   : > { %s2017_s18 = scalar_lea.hbm %s2983_s1, 16 }
  0x3b   : > { %p2018_p1 = scmp.ne.s32.totalorder %s2983_s1, %s2017_s18  ;;  %p2024_p8 = scmp.lt.u32.totalorder %s2017_s18, %s2983_s1 }
  0x3d   : > { %p2020_p2 = pnand %p2018_p1, %p2394_p0 }
  0x3f   : > { %p2021_p6 = pneg %p2020_p2 }
  0x41   : > { %p2026_p11 = pnand %p2024_p8, %p2021_p6 }
  0x43   : > { %2029 = shalt.err (!%p2026_p11)
}
  0x44   : > { %s2030_s11 = scalar_lea.vmem %s2384_s14, 16  ;;  %s2037_s13 = scalar_lea.vmem %s2384_s14, 32 }
  0x45   : > { %p2031_p5 = scmp.ne.s32.totalorder %s2384_s14, %s2030_s11  ;;  %p2038_p13 = scmp.lt.s32.totalorder %s2384_s14, %s2384_s14 }
  0x46   : > { %p2039_p3 = scmp.lt.s32.totalorder %s2037_s13, %s2030_s11 }
  0x47   : > { %p2033_p7 = pnand %p2031_p5, %p2394_p0 }
  0x48   : > { %p2040_p1 = por %p2039_p3, %p2038_p13 }
  0x49   : > { %p2034_p10 = pneg %p2033_p7 }
  0x4b   : > { %p2041_p2 = pnand %p2040_p1, %p2034_p10 }
  0x4d   : > { %2044 = shalt.err (!%p2041_p2)
}
  0x4e   : > { %1875 = dma.hbm_to_vmem [thread:$0]  (!%p2380_p12), %s2983_s1, 16, %s2384_s14, [#allocation7]  }
  0x4f   : > { %s2443_s17 = sadd.s32 1, %s2269_s27   ;;  %s116_s18 = sadd.s32 1, %s2265_s26 }
  0x50   : > { %2984 = sst [smem:[#allocation24_spill]] %s2443_s17  ;;  %s113_s19 = ssub.s32 %s2269_s27, %s2443_s17 }
  0x51   : > { %p123_p6 = scmp.ne.s32.totalorder %s2265_s26, %s2261_s25  ;;  %p114_p8 = scmp.eq.s32.totalorder %s113_s19, 0 }
  0x52   : > { %p124_p11 = scmp.eq.s32.totalorder %s2269_s27, 0  ;;  %p2985_p5 = scmp.eq.s32.totalorder %s2349_s28, 1 }
  0x53   : > { %p1897_p10 = scmp.lt.s32.totalorder %s2269_s27, 2  ;;  %s276_s23 = sand.u32 1, %s2269_s27  }
  0x54   : > { %p2453_p7 = por %p2985_p5, %p123_p6  ;;  %p125_p13 = por %p124_p11, %p123_p6 }
  0x55   : > { %s2459_s22 = scalar_select %p114_p8, %s2265_s26, %s116_s18  }
  0x56   : > { %s2986_s21 = scalar_select %p2453_p7, 1, 0 }
  0x57   : > { %2988 = sst [smem:[#allocation26_spill]] %s2459_s22  ;;  %s2953_s11 = sand.u32 1, %s2265_s26  }
  0x58   : > { %2987 = sst [smem:[#allocation25_spill]] %s2986_s21  ;;  %s1601_s14 = sshll.u32 %s2953_s11, 7 }
  0x59   : > { %s1669_s13 = sshll.u32 %s2269_s27, 11  ;;  %s2989_s4 = sld [smem:[#allocation29_spill]] }
  0x5a   : > { %s280_s19 = scalar_lea.vmem [#allocation11], %s1601_s14  ;;  %p2471_p3 = pnand %p1897_p10, %p125_p13 }
  0x5b   : > { %s287_s10 = sshll.u32 %s280_s19, 4  ;;  %s2275_s11 = smov [#allocation8]   ;;  %s2475_s10 = int_to_ptr.vmem [resolvable:$true] %s287_s10 }
  0x5c   : > { %s2990_s18 = scalar_select %p2471_p3, 1, 0 }
  0x5d   : > { %s2477_s0 = sshll.u32 %s2275_s11, 4  ;;  %s2479_s15 = scalar_lea.sflag [#allocation4], %s276_s23  ;;  %s250_s0 = int_to_ptr.vmem [resolvable:$true] %s2477_s0 }
  0x5e   : > { %p2961_p2 = pneg %p2471_p3 }
  0x5f   : > { %s2469_s29 = scalar_lea.hbm %s2989_s4, %s1669_s13  ;;  %s2050_s19 = scalar_lea.hbm %s2989_s4, 4096 }
  0x60   : > { %s2045_s13 = scalar_lea.hbm %s2469_s29, 2048  ;;  %p2051_p11 = scmp.lt.u32.totalorder %s2469_s29, %s2989_s4 }
  0x61   : > { %p2046_p1 = scmp.ne.s32.totalorder %s2469_s29, %s2045_s13  ;;  %p2052_p5 = scmp.lt.u32.totalorder %s2050_s19, %s2045_s13 }
  0x62   : > { %p2054_p13 = scmp.lt.u32.totalorder %s2045_s13, %s2469_s29 }
  0x63   : > { %p2048_p6 = pnand %p2961_p2, %p2046_p1  ;;  %p2053_p10 = por %p2052_p5, %p2051_p11 }
  0x65   : > { %p2049_p8 = pneg %p2048_p6  ;;  %p2055_p7 = por %p2054_p13, %p2053_p10 }
  0x67   : > { %p2056_p4 = pnand %p2055_p7, %p2049_p8 }
  0x69   : > { %2059 = shalt.err (!%p2056_p4)
}
  0x6a   : > { %s2060_s23 = scalar_lea.vmem %s2475_s10, 2048  ;;  %s2276_s11 = smov [#allocation11]  }
  0x6b   : > { %p2061_p1 = scmp.ne.s32.totalorder %s2475_s10, %s2060_s23  ;;  %s2065_s14 = sshll.u32 %s2276_s11, 4  ;;  %s2066_s14 = int_to_ptr.vmem [resolvable:$false] %s2065_s14 }
  0x6c   : > { %s2067_s1 = scalar_lea.vmem %s2066_s14, 4096  ;;  %p2068_p12 = scmp.lt.s32.totalorder %s2475_s10, %s2066_s14 }
  0x6d   : > { %p2063_p6 = pnand %p2061_p1, %p2961_p2  ;;  %p2069_p11 = scmp.lt.s32.totalorder %s2067_s1, %s2060_s23 }
  0x6f   : > { %p2064_p9 = pneg %p2063_p6  ;;  %p2070_p5 = por %p2069_p11, %p2068_p12 }
  0x71   : > { %p2071_p10 = pnand %p2070_p5, %p2064_p9 }
  0x73   : > { %2074 = shalt.err (!%p2071_p10)
}
  0x74   : > { %s2991_s22 = smov 4   ;;  %s2992_s13 = smov 64  }
  0x75   : > { %1885 = dma.hbm_to_vmem [thread:$0]  (!%p2471_p3), %s2469_s29, 2048, %s2475_s10, %s2479_s15, %s2992_s13, %s2992_s13, %s2991_s22  }
  0x76   : > { %s2075_s11 = scalar_lea.hbm %s2942_s2, 2048 }
  0x77   : > { %p2076_p4 = scmp.ne.s32.totalorder %s2942_s2, %s2075_s11  ;;  %p2082_p7 = scmp.lt.u32.totalorder %s2075_s11, %s2942_s2 }
  0x79   : > { %p2078_p9 = pnand %p2076_p4, %p2394_p0 }
  0x7b   : > { %p2079_p12 = pneg %p2078_p9 }
  0x7d   : > { %p2084_p8 = pnand %p2082_p7, %p2079_p12 }
  0x7f   : > { %2087 = shalt.err (!%p2084_p8)
}
  0x80   : > { %s2088_s17 = scalar_lea.vmem %s250_s0, 2048  ;;  %p2096_p11 = scmp.lt.s32.totalorder %s250_s0, %s250_s0 }
  0x81   : > { %p2089_p13 = scmp.ne.s32.totalorder %s250_s0, %s2088_s17  ;;  %p2097_p5 = scmp.lt.s32.totalorder %s2088_s17, %s2088_s17 }
  0x83   : > { %p2091_p1 = pnand %p2089_p13, %p2394_p0  ;;  %p2098_p10 = por %p2097_p5, %p2096_p11 }
  0x85   : > { %p2092_p6 = pneg %p2091_p1 }
  0x87   : > { %p2099_p2 = pnand %p2098_p10, %p2092_p6 }
  0x89   : > { %2102 = shalt.err (!%p2099_p2)
}
  0x8a   : > { %s2277_s29 = smov 128   ;;  %s2278_s10 = smov 8  }
  0x8b   : > { %p2993_p4 = scmp.ne.s32.totalorder %s2980_s12, 0  ;;  %s2279_s19 = smov [#allocation9]  }
  0x8c   : > { %s262_s11 = sshll.u32 %s2279_s19, 4  ;;  %s2994_s23 = sand.u32 1, %s2265_s26   ;;  %s263_s11 = int_to_ptr.vmem [resolvable:$true] %s262_s11 }
  0x8d   : > { %1878 = dma.hbm_to_vmem [thread:$0]  (!%p2993_p4), %s2942_s2, 2048, %s250_s0, [#allocation7], %s2277_s29, %s2277_s29, %s2278_s10  }
  0x8e   : > { %s1604_s14 = sshll.u32 %s2994_s23, 2  ;;  %s2103_s8 = scalar_lea.hbm %s2943_s3, 1024 }
  0x8f   : > { %p2104_p2 = scmp.ne.s32.totalorder %s2943_s3, %s2103_s8  ;;  %p2110_p7 = scmp.lt.u32.totalorder %s2103_s8, %s2943_s3 }
  0x91   : > { %p2106_p9 = pnand %p2104_p2, %p2394_p0 }
  0x93   : > { %p2107_p12 = pneg %p2106_p9 }
  0x95   : > { %p2112_p8 = pnand %p2110_p7, %p2107_p12 }
  0x97   : > { %2115 = shalt.err (!%p2112_p8)
}
  0x98   : > { %s2116_s0 = scalar_lea.vmem %s263_s11, 1024  ;;  %p2124_p11 = scmp.lt.s32.totalorder %s263_s11, %s263_s11 }
  0x99   : > { %p2117_p13 = scmp.ne.s32.totalorder %s263_s11, %s2116_s0  ;;  %p2125_p5 = scmp.lt.s32.totalorder %s2116_s0, %s2116_s0 }
  0x9b   : > { %p2119_p1 = pnand %p2117_p13, %p2394_p0  ;;  %p2126_p10 = por %p2125_p5, %p2124_p11 }
  0x9d   : > { %p2120_p6 = pneg %p2119_p1 }
  0x9f   : > { %p2127_p3 = pnand %p2126_p10, %p2120_p6 }
  0xa1   : > { %2130 = shalt.err (!%p2127_p3)
}
  0xa2   : > { %1881 = dma.hbm_to_vmem [thread:$0]  (!%p2993_p4), %s2943_s3, 1024, %s263_s11, [#allocation10], %s2992_s13, %s2992_s13, %s2991_s22  }
  0xa3   : > { %s1605_s24 = sshll.u32 %s2269_s27, 6  ;;  %s301_s8 = scalar_lea.vmem [#allocation12], %s1604_s14 }
  0xa4   : > { %s308_s20 = sshll.u32 %s301_s8, 4  ;;  %s306_s10 = scalar_lea.hbm %s2945_s5, %s1605_s24  ;;  %s309_s20 = int_to_ptr.vmem [resolvable:$true] %s308_s20 }
  0xa5   : > { %s2131_s4 = scalar_lea.hbm %s306_s10, 64  ;;  %p2995_p3 = scmp.ne.s32.totalorder %s2990_s18, 0 }
  0xa6   : > { %p2132_p0 = scmp.ne.s32.totalorder %s306_s10, %s2131_s4  ;;  %s2136_s19 = scalar_lea.hbm %s2945_s5, 128 }
  0xa7   : > { %p2996_p2 = pneg %p2995_p3  ;;  %p2137_p4 = scmp.lt.u32.totalorder %s306_s10, %s2945_s5 }
  0xa8   : > { %p2138_p7 = scmp.lt.u32.totalorder %s2136_s19, %s2131_s4  ;;  %p2140_p13 = scmp.lt.u32.totalorder %s2131_s4, %s306_s10 }
  0xa9   : > { %p2134_p9 = pnand %p2132_p0, %p2996_p2 }
  0xaa   : > { %p2139_p8 = por %p2138_p7, %p2137_p4 }
  0xab   : > { %p2135_p12 = pneg %p2134_p9 }
  0xac   : > { %p2141_p1 = por %p2140_p13, %p2139_p8 }
  0xae   : > { %p2142_p6 = pnand %p2141_p1, %p2135_p12 }
  0xb0   : > { %2145 = shalt.err (!%p2142_p6)
}
  0xb1   : > { %s2146_s13 = scalar_lea.vmem %s309_s20, 64  ;;  %p2997_p5 = pmov %p2996_p2 }
  0xb2   : > { %p2147_p11 = scmp.ne.s32.totalorder %s309_s20, %s2146_s13  ;;  %s2280_s11 = smov [#allocation12]  }
  0xb3   : > { %s2151_s14 = sshll.u32 %s2280_s11, 4  ;;  %s2152_s14 = int_to_ptr.vmem [resolvable:$false] %s2151_s14 }
  0xb4   : > { %p2149_p10 = pnand %p2147_p11, %p2997_p5  ;;  %s2153_s1 = scalar_lea.vmem %s2152_s14, 128 }
  0xb5   : > { %p2154_p2 = scmp.lt.s32.totalorder %s309_s20, %s2152_s14  ;;  %p2155_p9 = scmp.lt.s32.totalorder %s2153_s1, %s2146_s13 }
  0xb6   : > { %p2150_p0 = pneg %p2149_p10 }
  0xb7   : > { %p2156_p4 = por %p2155_p9, %p2154_p2 }
  0xb9   : > { %p2157_p7 = pnand %p2156_p4, %p2150_p0 }
  0xbb   : > { %2160 = shalt.err (!%p2157_p7)
}
  0xbc   : > { %1888 = dma.hbm_to_vmem [thread:$0]  (!%p2995_p3), %s306_s10, 64, %s309_s20, %s2479_s15  }
  0xbd   : > { %p2998_p12 = scmp.ne.s32.totalorder %s2979_s9, 0 }
  0xbe   : > { %p2999_p8 = scmp.eq.s32.totalorder (!%p2998_p12), %s2349_s28, 0 }
  0xbf   : > { %317 = sbr.rel (%p2998_p12) target bundleno = 1328 (0x530), region = 44 }
  0xc6   : > { %2232 = dma.done.wait (%p2999_p8), [#allocation4], 1024   ;;  %p3000_p13 = pmov %p2999_p8 }
  0xc7   : > { %p3001_p1 = pmov %p2999_p8 }
  0xc8   : > { %2234 = vsyncadd (%p3000_p13), [#allocation4], 4294966272 }
  0xc9   : > { %2236 = dma.done.wait (%p3001_p1), [#allocation7], 2064   ;;  %p3002_p6 = pmov %p3001_p1 }
  0xca   : > { %p3003_p11 = pmov %p3001_p1 }
  0xcb   : > { %2238 = vsyncadd (%p3002_p6), [#allocation7], 4294965232 }
  0xcc   : > { %2240 = dma.done.wait (%p3003_p11), [#allocation10], 1024   ;;  %p3004_p3 = pmov %p3001_p1 }
  0xcd   : > { %s335_s9 = sand.u32 1, %s2349_s28   ;;  %s2587_s18 = sand.u32 1, %s2261_s25  }
  0xce   : > { %2242 = vsyncadd (%p3004_p3), [#allocation10], 4294966272  ;;  %s1611_s15 = sshll.u32 %s2587_s18, 7  ;;  %s336_s17 = scalar_lea.sflag [#allocation4], %s335_s9 }
  0xcf   : > { %s2590_s0 = scalar_lea.vmem [#allocation11], %s1611_s15  ;;  %p3005_p5 = scmp.ne.s32.totalorder %s2976_s30, 0 }
  0xd1   : > { %2244 = dma.done.wait (%p3005_p5), %s336_s17, 2112  }
  0xd2   : > { %2246 = vsyncadd (%p3005_p5), %s336_s17, 4294965184  ;;  %s1612_s6 = sshll.u32 %s2587_s18, 2  ;;  %s1613_s7 = sshll.u32 %s2587_s18, 1 }
  0xd3   : > { %s2598_s24 = scalar_lea.vmem [#allocation12], %s1612_s6  ;;  %s2600_s8 = scalar_lea.vmem [#allocation14], %s1613_s7 }
  0xd4   : > { %p3006_p10 = scmp.ne.s32.totalorder %s2349_s28, 0 }
  0xd5   : > { %v1951_v0 = vld [vmem:[#allocation9] sm:$0xff] (!%p3006_p10)   ;;  %v1952_v1 = vld [vmem:[#allocation9 + $0x8] sm:$0xff] (!%p3006_p10)   ;;  %v1953_v2 = vld [vmem:[#allocation9 + $0x10] sm:$0xff] (!%p3006_p10)  }
  0xd6   : > { %388 = sbr.rel (%p3006_p10) target bundleno = 221 (0xdd), region = 72  ;;  %453 = vst [vmem:[#allocation2] sm:$0xff] (!%p3006_p10), %v1951_v0  ;;  %454 = vst [vmem:[#allocation2 + $0x8] sm:$0xff] (!%p3006_p10), %v1952_v1  ;;  %v1954_v3 = vld [vmem:[#allocation9 + $0x18] sm:$0xff] (!%p3006_p10)   ;;  %v1955_v4 = vld [vmem:[#allocation9 + $0x20] sm:$0xff] (!%p3006_p10)  }
  0xd7   : > { %455 = vst [vmem:[#allocation2 + $0x10] sm:$0xff] (!%p3006_p10), %v1953_v2  ;;  %456 = vst [vmem:[#allocation2 + $0x18] sm:$0xff] (!%p3006_p10), %v1954_v3  ;;  %v1956_v5 = vld [vmem:[#allocation9 + $0x28] sm:$0xff] (!%p3006_p10)   ;;  %v1957_v6 = vld [vmem:[#allocation9 + $0x30] sm:$0xff] (!%p3006_p10)  }
  0xd8   : > { %457 = vst [vmem:[#allocation2 + $0x20] sm:$0xff] (!%p3006_p10), %v1955_v4  ;;  %458 = vst [vmem:[#allocation2 + $0x28] sm:$0xff] (!%p3006_p10), %v1956_v5  ;;  %v1958_v7 = vld [vmem:[#allocation9 + $0x38] sm:$0xff] (!%p3006_p10)  }
  0xd9   : > { %459 = vst [vmem:[#allocation2 + $0x30] sm:$0xff] (!%p3006_p10), %v1957_v6  ;;  %460 = vst [vmem:[#allocation2 + $0x38] sm:$0xff] (!%p3006_p10), %v1958_v7 }
  0xdd PF: > { %v477_v8 = vld [vmem:[#allocation2] sm:$0xff]  ;;  %v478_v9 = vld [vmem:[#allocation2 + $0x8] sm:$0xff]  ;;  %v1971_v16 = vld [vmem:[%s2590_s0 + $0x10] sm:$0xff]   ;;  %v2281_v34 = vmov 0   ;;  %vm2283_vm0 = vmmov 0   ;;  %s2284_s30 = smov [#allocation13]  }
  0xde   : > { %1727 = vmatprep.subr.bf16.mxu0 %v477_v8  ;;  %v1961_v10 = vld [vmem:[#allocation3] sm:$0xff]   ;;  %v479_v11 = vld [vmem:[#allocation2 + $0x10] sm:$0xff]  ;;  %v480_v12 = vld [vmem:[#allocation2 + $0x18] sm:$0xff]  ;;  %1959 = vset.pattern.permute.xlu0 %v2281_v34  ;;  %s1437_s20 = sshll.u32 %s2284_s30, 4  ;;  %p3007_p2 = scmp.eq.s32.totalorder %s2349_s28, 1  ;;  %s1438_s20 = int_to_ptr.vmem [resolvable:$true] %s1437_s20 }
  0xdf   : > { %1728 = vmatpush3.bf16.msra.mxu0 %v477_v8  ;;  %1743 = vmatprep.mubr.bf16.mxu0 %v1961_v10  ;;  %v481_v13 = vld [vmem:[#allocation2 + $0x20] sm:$0xff]  ;;  %v1970_v15 = vld [vmem:[%s2590_s0 + $0x8] sm:$0xff]   ;;  %v1975_v25 = vld [vmem:[%s2590_s0 + $0x30] sm:$0xff]   ;;  %s2161_s21 = scalar_lea.vmem %s1438_s20, 2048  ;;  %p2168_p7 = scmp.lt.s32.totalorder %s1438_s20, %s1438_s20 }
  0xe0   : > { %1729 = vmatprep.subr.bf16.mxu0 %v478_v9  ;;  %v1969_v14 = vld [vmem:[%s2590_s0] sm:$0xff]   ;;  %v1972_v18 = vld [vmem:[%s2590_s0 + $0x18] sm:$0xff]   ;;  %v483_v19 = vld [vmem:[#allocation2 + $0x30] sm:$0xff]  ;;  %1960 = vset.pattern.permute.xlu1 %v2281_v34  ;;  %p2162_p0 = scmp.ne.s32.totalorder %s1438_s20, %s2161_s21  ;;  %p2169_p12 = scmp.lt.s32.totalorder %s2161_s21, %s2161_s21 }
  0xe1   : > { %1759 = vmatprep.subr.bf16.mxu1 %v1969_v14  ;;  %v482_v17 = vld [vmem:[#allocation2 + $0x28] sm:$0xff]  ;;  %v484_v21 = vld [vmem:[#allocation2 + $0x38] sm:$0xff]  ;;  %v1963_v24 = vld [vmem:[#allocation3 + $0x10] sm:$0xff]  }
  0xe2   : > { %1760 = vmatpush3.bf16.msra.mxu1 %v1969_v14  ;;  %v1973_v20 = vld [vmem:[%s2590_s0 + $0x20] sm:$0xff]   ;;  %v1974_v22 = vld [vmem:[%s2590_s0 + $0x28] sm:$0xff]   ;;  %v1964_v26 = vld [vmem:[#allocation3 + $0x18] sm:$0xff]   ;;  %p2163_p9 = pnand %p2162_p0, %p3007_p2  ;;  %p2170_p8 = por %p2169_p12, %p2168_p7 }
  0xe3   : > { %1730 = vmatpush3.bf16.msra.mxu0 %v478_v9  ;;  %1761 = vmatprep.subr.bf16.mxu1 %v1970_v15  ;;  %v1962_v23 = vld [vmem:[#allocation3 + $0x8] sm:$0xff]   ;;  %v1965_v27 = vld [vmem:[#allocation3 + $0x20] sm:$0xff]   ;;  %v1967_v29 = vld [vmem:[#allocation3 + $0x30] sm:$0xff]  }
  0xe4   : > { %1731 = vmatprep.subr.bf16.mxu0 %v479_v11  ;;  %v1966_v28 = vld [vmem:[#allocation3 + $0x28] sm:$0xff]   ;;  %v1968_v30 = vld [vmem:[#allocation3 + $0x38] sm:$0xff]   ;;  %p2164_p4 = pneg %p2163_p9 }
  0xe5   : > { %v1976_v31 = vld [vmem:[%s2590_s0 + $0x38] sm:$0xff]   ;;  %v927_v32 = vld [vmem:[#allocation8] sm:$0xff]  ;;  %v929_v33 = vld [vmem:[#allocation8 + $0x10] sm:$0xff] }
  0xe6   : > { %1762 = vmatpush3.bf16.msra.mxu1 %v1970_v15  ;;  %945 = vperm.xlu0 %1959, %v927_v32   ;;  %v928_v35 = vld [vmem:[#allocation8 + $0x8] sm:$0xff]  ;;  %v930_v36 = vld [vmem:[#allocation8 + $0x18] sm:$0xff]  ;;  %v931_v37 = vld [vmem:[#allocation8 + $0x20] sm:$0xff]  ;;  %p2171_p13 = pnand %p2170_p8, %p2164_p4 }
  0xe7   : > { %1732 = vmatpush3.bf16.msra.mxu0 %v479_v11  ;;  %1763 = vmatprep.subr.bf16.mxu1 %v1971_v16  ;;  %v932_v38 = vld [vmem:[#allocation8 + $0x28] sm:$0xff]  ;;  %v933_v39 = vld [vmem:[#allocation8 + $0x30] sm:$0xff]  ;;  %v934_v40 = vld [vmem:[#allocation8 + $0x38] sm:$0xff] }
  0xe8   : > { %1733 = vmatprep.subr.bf16.mxu0 %v480_v12  ;;  %955 = vperm.xlu1 %1960, %v929_v33   ;;  %v935_v41 = vld [vmem:[#allocation8 + $0x40] sm:$0xff]  ;;  %v936_v42 = vld [vmem:[#allocation8 + $0x48] sm:$0xff]  ;;  %v937_v43 = vld [vmem:[#allocation8 + $0x50] sm:$0xff] }
  0xe9   : > { %v938_v44 = vld [vmem:[#allocation8 + $0x58] sm:$0xff]  ;;  %v939_v45 = vld [vmem:[#allocation8 + $0x60] sm:$0xff]  ;;  %v940_v46 = vld [vmem:[#allocation8 + $0x68] sm:$0xff] }
  0xea   : > { %1764 = vmatpush3.bf16.msra.mxu1 %v1971_v16  ;;  %950 = vperm.xlu0 %1959, %v928_v35   ;;  %v941_v47 = vld [vmem:[#allocation8 + $0x70] sm:$0xff]  ;;  %v942_v48 = vld [vmem:[#allocation8 + $0x78] sm:$0xff]  ;;  %v1977_v9 = vld [vmem:[%s2590_s0 + $0x40] sm:$0xff]  }
  0xeb   : > { %1734 = vmatpush3.bf16.msra.mxu0 %v480_v12  ;;  %1765 = vmatprep.subr.bf16.mxu1 %v1972_v18  ;;  %v1978_v10 = vld [vmem:[%s2590_s0 + $0x48] sm:$0xff]   ;;  %v1979_v11 = vld [vmem:[%s2590_s0 + $0x50] sm:$0xff]   ;;  %v1980_v12 = vld [vmem:[%s2590_s0 + $0x58] sm:$0xff]  }
  0xec   : > { %1735 = vmatprep.subr.bf16.mxu0 %v481_v13  ;;  %960 = vperm.xlu1 %1960, %v930_v36   ;;  %v1982_v14 = vld [vmem:[%s2590_s0 + $0x68] sm:$0xff]   ;;  %v1983_v15 = vld [vmem:[%s2590_s0 + $0x70] sm:$0xff]   ;;  %v1984_v16 = vld [vmem:[%s2590_s0 + $0x78] sm:$0xff]  }
  0xee   : > { %1766 = vmatpush3.bf16.msra.mxu1 %v1972_v18  ;;  %965 = vperm.xlu0 %1959, %v931_v37  }
  0xef   : > { %1736 = vmatpush3.bf16.msra.mxu0 %v481_v13  ;;  %1767 = vmatprep.subr.bf16.mxu1 %v1973_v20  ;;  %v1981_v13 = vld [vmem:[%s2590_s0 + $0x60] sm:$0xff]  }
  0xf0   : > { %1737 = vmatprep.subr.bf16.mxu0 %v482_v17  ;;  %970 = vperm.xlu1 %1960, %v932_v38  }
  0xf2   : > { %1768 = vmatpush3.bf16.msra.mxu1 %v1973_v20  ;;  %975 = vperm.xlu0 %1959, %v933_v39  }
  0xf3   : > { %1738 = vmatpush3.bf16.msra.mxu0 %v482_v17  ;;  %1769 = vmatprep.subr.bf16.mxu1 %v1974_v22 }
  0xf4   : > { %1739 = vmatprep.subr.bf16.mxu0 %v483_v19  ;;  %980 = vperm.xlu1 %1960, %v934_v40  }
  0xf6   : > { %1770 = vmatpush3.bf16.msra.mxu1 %v1974_v22  ;;  %985 = vperm.xlu0 %1959, %v935_v41  }
  0xf7   : > { %1740 = vmatpush3.bf16.msra.mxu0 %v483_v19  ;;  %1771 = vmatprep.subr.bf16.mxu1 %v1975_v25 }
  0xf8   : > { %1741 = vmatprep.subr.bf16.mxu0 %v484_v21  ;;  %990 = vperm.xlu1 %1960, %v936_v42  }
  0xfa   : > { %1772 = vmatpush3.bf16.msra.mxu1 %v1975_v25  ;;  %995 = vperm.xlu0 %1959, %v937_v43  }
  0xfb   : > { %1742 = vmatpush3.bf16.msra.mxu0 %v484_v21  ;;  %1773 = vmatprep.subr.bf16.mxu1 %v1976_v31 }
  0xfc   : > { %1000 = vperm.xlu1 %1960, %v938_v44   ;;  %1791 = vmatprep.subr.bf16.mxu0 %v1977_v9 }
  0xfe   : > { %1744 = vmatmul.mubr.bf16.vlgmr.msra.gmra.mrb[0].mxu0 %v1962_v23  ;;  %1774 = vmatpush3.bf16.msra.mxu1 %v1976_v31 }
  0xff   : > { %1747 = vmatprep.mubr.bf16.mxu0 %v1963_v24  ;;  %1005 = vperm.xlu0 %1959, %v939_v45  }
 0x100   : > { %1010 = vperm.xlu1 %1960, %v940_v46   ;;  %1792 = vmatpush3.bf16.msra.mxu0 %v1977_v9 }
 0x101   : > { %1793 = vmatprep.subr.bf16.mxu0 %v1978_v10 }
 0x103   : > { %1015 = vperm.xlu0 %1959, %v941_v47  }
 0x104   : > { %1020 = vperm.xlu1 %1960, %v942_v48   ;;  %1794 = vmatpush3.bf16.msra.mxu0 %v1978_v10 }
 0x105   : > { %1795 = vmatprep.subr.bf16.mxu0 %v1979_v11 }
 0x106   : > { %1748 = vmatmul.mubr.bf16.gmra.mrb[4].mxu0 %v1964_v26 }
 0x107   : > { %1751 = vmatprep.mubr.bf16.mxu0 %v1965_v27 }
 0x108   : > { %1796 = vmatpush3.bf16.msra.mxu0 %v1979_v11 }
 0x109   : > { %1797 = vmatprep.subr.bf16.mxu0 %v1980_v12 }
 0x10c   : > { %1798 = vmatpush3.bf16.msra.mxu0 %v1980_v12 }
 0x10d   : > { %1799 = vmatprep.subr.bf16.mxu0 %v1981_v13 }
 0x10e   : > { %1752 = vmatmul.mubr.bf16.gmra.mrb[8].mxu0 %v1966_v28 }
 0x10f   : > { %1755 = vmatprep.mubr.bf16.mxu0 %v1967_v29 }
 0x110   : > { %1800 = vmatpush3.bf16.msra.mxu0 %v1981_v13 }
 0x111   : > { %1801 = vmatprep.subr.bf16.mxu0 %v1982_v14 }
 0x114   : > { %1802 = vmatpush3.bf16.msra.mxu0 %v1982_v14 }
 0x115   : > { %1803 = vmatprep.subr.bf16.mxu0 %v1983_v15 }
 0x116   : > { %1756 = vmatmul.mubr.bf16.gmra.mrb[12].mxu0 %v1968_v30 }
 0x118   : > { %1804 = vmatpush3.bf16.msra.mxu0 %v1983_v15 }
 0x119   : > { %1805 = vmatprep.subr.bf16.mxu0 %v1984_v16 }
 0x11c   : > { %1806 = vmatpush3.bf16.msra.mxu0 %v1984_v16 }
 0x1d1   : > { %v1745_v49 = vpop.f32.mrb[0].mxu0 }
 0x1d2   : > { %v567_v50 = vpop.f32.mrb[1].mxu0 }
 0x1d3   : > { %v1746_v51 = vpop.f32.mrb[2].mxu0 }
 0x1d4   : > { %v632_v52 = vpack.c.bf16 %v1746_v51, %v1745_v49  ;;  %v570_v53 = vpop.f32.mrb[3].mxu0 }
 0x1d5   : > { %v631_v54 = vpack.c.bf16 %v570_v53, %v567_v50 }
 0x1d7   : > { %1775 = vmatprep.mubr.bf16.mxu1 %v631_v54 }
 0x1d8   : > { %1776 = vmatmul.mubr.bf16.vlgmr.msra.gmra.mrb[0].mxu1 %v632_v52 }
 0x1d9   : > { %v1749_v55 = vpop.f32.mrb[4].mxu0 }
 0x1da   : > { %v583_v56 = vpop.f32.mrb[5].mxu0 }
 0x1db   : > { %v1750_v57 = vpop.f32.mrb[6].mxu0 }
 0x1dc   : > { %v634_v58 = vpack.c.bf16 %v1750_v57, %v1749_v55  ;;  %v586_v59 = vpop.f32.mrb[7].mxu0 }
 0x1dd   : > { %v633_v60 = vpack.c.bf16 %v586_v59, %v583_v56 }
 0x1df   : > { %1779 = vmatprep.mubr.bf16.mxu1 %v633_v60 }
 0x1e0   : > { %1780 = vmatmul.mubr.bf16.gmra.mrb[4].mxu1 %v634_v58 }
 0x1e1   : > { %v1753_v61 = vpop.f32.mrb[8].mxu0 }
 0x1e2   : > { %v599_v62 = vpop.f32.mrb[9].mxu0 }
 0x1e3   : > { %v1754_v63 = vpop.f32.mrb[10].mxu0 }
 0x1e4   : > { %v636_v0 = vpack.c.bf16 %v1754_v63, %v1753_v61  ;;  %v602_v1 = vpop.f32.mrb[11].mxu0 }
 0x1e5   : > { %v635_v2 = vpack.c.bf16 %v602_v1, %v599_v62 }
 0x1e7   : > { %1783 = vmatprep.mubr.bf16.mxu1 %v635_v2 }
 0x1e8   : > { %1784 = vmatmul.mubr.bf16.gmra.mrb[8].mxu1 %v636_v0 }
 0x1e9   : > { %v1757_v3 = vpop.f32.mrb[12].mxu0 }
 0x1ea   : > { %v615_v4 = vpop.f32.mrb[13].mxu0 }
 0x1eb   : > { %v1758_v5 = vpop.f32.mrb[14].mxu0 }
 0x1ec   : > { %v638_v6 = vpack.c.bf16 %v1758_v5, %v1757_v3  ;;  %v618_v7 = vpop.f32.mrb[15].mxu0 }
 0x1ed   : > { %v637_v8 = vpack.c.bf16 %v618_v7, %v615_v4 }
 0x1ef   : > { %1787 = vmatprep.mubr.bf16.mxu1 %v637_v8 }
 0x1f0   : > { %1788 = vmatmul.mubr.bf16.gmra.mrb[12].mxu1 %v638_v6 }
 0x2ab   : > { %v2620_v17 = vpop.f32.mrb[0].mxu1 }
 0x2ac   : > { %v2622_v18 = vpop.f32.mrb[1].mxu1  ;;  %v823_v24 = vmul.f32 %v2620_v17, %v2620_v17 }
 0x2ad   : > { %v2624_v19 = vpop.f32.mrb[2].mxu1  ;;  %v821_v21 = vmul.f32 %v2622_v18, %v2622_v18 }
 0x2ae   : > { %v2626_v20 = vpop.f32.mrb[3].mxu1  ;;  %v824_v27 = vmul.f32 %v2624_v19, %v2624_v19 }
 0x2af   : > { %v800_v22 = vadd.f32 %v2626_v20, %v2622_v18  ;;  %v822_v23 = vmul.f32 %v2626_v20, %v2626_v20 }
 0x2b1   : > { %v801_v25 = vadd.f32 %v2620_v17, %v800_v22  ;;  %v837_v26 = vadd.f32 %v822_v23, %v821_v21 }
 0x2b3   : > { %v838_v28 = vadd.f32 %v837_v26, %v823_v24  ;;  %v2639_v29 = vpop.f32.mrb[4].mxu1  ;;  %v802_v30 = vadd.f32 %v2624_v19, %v801_v25 }
 0x2b4   : > { %v2642_v31 = vpop.f32.mrb[5].mxu1  ;;  %v827_v40 = vmul.f32 %v2639_v29, %v2639_v29 }
 0x2b5   : > { %v803_v32 = vadd.f32 %v802_v30, %v2642_v31  ;;  %v825_v33 = vmul.f32 %v2642_v31, %v2642_v31  ;;  %v839_v34 = vadd.f32 %v838_v28, %v824_v27  ;;  %v2647_v35 = vpop.f32.mrb[6].mxu1 }
 0x2b6   : > { %v2649_v36 = vpop.f32.mrb[7].mxu1  ;;  %v828_v43 = vmul.f32 %v2647_v35, %v2647_v35 }
 0x2b7   : > { %v840_v37 = vadd.f32 %v839_v34, %v825_v33  ;;  %v804_v38 = vadd.f32 %v803_v32, %v2649_v36  ;;  %v826_v39 = vmul.f32 %v2649_v36, %v2649_v36  ;;  %v2695_v34 = vpop.permute.xlu0 %945 }
 0x2b9   : > { %v805_v41 = vadd.f32 %v2639_v29, %v804_v38  ;;  %v841_v42 = vadd.f32 %v840_v37, %v826_v39  ;;  %v2697_v37 = vpop.permute.xlu1 %955 }
 0x2bb   : > { %v842_v44 = vadd.f32 %v841_v42, %v827_v40  ;;  %v2659_v45 = vpop.f32.mrb[8].mxu1  ;;  %v806_v46 = vadd.f32 %v2647_v35, %v805_v41  ;;  %v2699_v42 = vpop.permute.xlu0 %950 }
 0x2bc   : > { %v2662_v47 = vpop.f32.mrb[9].mxu1  ;;  %v831_v56 = vmul.f32 %v2659_v45, %v2659_v45 }
 0x2bd   : > { %v807_v48 = vadd.f32 %v806_v46, %v2662_v47  ;;  %v829_v49 = vmul.f32 %v2662_v47, %v2662_v47  ;;  %v843_v50 = vadd.f32 %v842_v44, %v828_v43  ;;  %v2667_v51 = vpop.f32.mrb[10].mxu1  ;;  %v2701_v43 = vpop.permute.xlu1 %960  ;;  %v871_v46 = vlaneseq }
 0x2be   : > { %v2669_v52 = vpop.f32.mrb[11].mxu1  ;;  %v832_v59 = vmul.f32 %v2667_v51, %v2667_v51 }
 0x2bf   : > { %v844_v53 = vadd.f32 %v843_v50, %v829_v49  ;;  %v808_v54 = vadd.f32 %v807_v48, %v2669_v52  ;;  %v830_v55 = vmul.f32 %v2669_v52, %v2669_v52  ;;  %v2703_v48 = vpop.permute.xlu0 %965  ;;  %v2707_v50 = vshrl.u32 %v871_v46, 7 }
 0x2c1   : > { %v809_v57 = vadd.f32 %v2659_v45, %v808_v54  ;;  %v845_v58 = vadd.f32 %v844_v53, %v830_v55  ;;  %v2705_v49 = vpop.permute.xlu1 %970  ;;  %v2710_v53 = vld [vmem:[%s2598_s24] sm:$0xf]  ;;  %v873_v54 = vsub.s32 0, %v2707_v50 }
 0x2c3   : > { %v846_v60 = vadd.f32 %v845_v58, %v831_v56  ;;  %v2679_v61 = vpop.f32.mrb[12].mxu1  ;;  %v810_v62 = vadd.f32 %v2667_v51, %v809_v57  ;;  %v2713_v55 = vpop.permute.xlu0 %975 }
 0x2c4   : > { %v2682_v63 = vpop.f32.mrb[13].mxu1  ;;  %v835_v8 = vmul.f32 %v2679_v61, %v2679_v61 }
 0x2c5   : > { %v811_v0 = vadd.f32 %v810_v62, %v2682_v63  ;;  %v833_v1 = vmul.f32 %v2682_v63, %v2682_v63  ;;  %v847_v2 = vadd.f32 %v846_v60, %v832_v59  ;;  %v2687_v3 = vpop.f32.mrb[14].mxu1  ;;  %v2715_v56 = vpop.permute.xlu1 %980  ;;  %v893_v62 = vsub.s32 1, %v2707_v50 }
 0x2c6   : > { %v788_v4 = vpop.f32.mrb[15].mxu1  ;;  %v836_v11 = vmul.f32 %v2687_v3, %v2687_v3 }
 0x2c7   : > { %v848_v5 = vadd.f32 %v847_v2, %v833_v1  ;;  %v812_v6 = vadd.f32 %v811_v0, %v788_v4  ;;  %v834_v7 = vmul.f32 %v788_v4, %v788_v4 }
 0x2c9   : > { %v813_v9 = vadd.f32 %v2679_v61, %v812_v6  ;;  %v849_v10 = vadd.f32 %v848_v5, %v834_v7  ;;  %v2721_v6 = vpop.permute.xlu0 %985  ;;  %v2723_v7 = vpop.permute.xlu1 %990 }
 0x2cb   : > { %v814_v12 = vadd.f32 %v2687_v3, %v813_v9  ;;  %v850_v13 = vadd.f32 %v849_v10, %v835_v8 }
 0x2cd   : > { %v815_v14 = vrot.slane %v814_v12, 4  ;;  %v851_v15 = vadd.f32 %v850_v13, %v836_v11 }
 0x2cf   : > { %v816_v16 = vadd.f32 %v815_v14, %v814_v12  ;;  %v852_v21 = vrot.slane %v851_v15, 4 }
 0x2d1   : > { %v817_v22 = vrot.slane %v816_v16, 2  ;;  %v853_v23 = vadd.f32 %v852_v21, %v851_v15 }
 0x2d3   : > { %v818_v24 = vadd.f32 %v817_v22, %v816_v16  ;;  %v854_v25 = vrot.slane %v853_v23, 2 }
 0x2d5   : > { %v819_v26 = vrot.slane %v818_v24, 1  ;;  %v855_v27 = vadd.f32 %v854_v25, %v853_v23 }
 0x2d7   : > { %v820_v28 = vadd.f32 %v819_v26, %v818_v24  ;;  %v856_v30 = vrot.slane %v855_v27, 1 }
 0x2d9   : > { %v857_v32 = vadd.f32 %v856_v30, %v855_v27  ;;  %v858_v33 = vmul.f32 0.0625, %v820_v28 }
 0x2db   : > { %v859_v38 = vmul.f32 0.0625, %v857_v32  ;;  %v860_v39 = vmul.f32 %v858_v33, %v858_v33 }
 0x2dd   : > { %v861_v40 = vsub.f32 %v859_v38, %v860_v39 }
 0x2df   : > { %v862_v41 = vmax.f32 %v861_v40, 0.0 }
 0x2e1   : > { %v863_v44 = vadd.f32 1e-05, %v862_v41 }
 0x2e3   : > { %1985 = vrsqrt.f32 %v863_v44 }
 0x2ed   : > { %v1986_v57 = vpop.eup %1985 }
 0x2ee   : > { %v865_v58 = vmul.f32 %v1986_v57, %v2710_v53 }
 0x2f0   : > { %v866_v59 = vmul.f32 %v865_v58, %v858_v33  ;;  %v874_v60 = vrot.slane %v865_v58, %v873_v54 }
 0x2f2   : > { %v868_v0 = vrot.slane %v866_v59, 7  ;;  %v888_v1 = vmul.f32 %v874_v60, %v788_v4  ;;  %v875_v2 = vmul.f32 %v874_v60, %v2622_v18  ;;  %v877_v5 = vmul.f32 %v2620_v17, %v874_v60 }
 0x2f3   : > { %v876_v8 = vmul.f32 %v874_v60, %v2626_v20  ;;  %v878_v9 = vmul.f32 %v2624_v19, %v874_v60  ;;  %v879_v10 = vmul.f32 %v874_v60, %v2642_v31  ;;  %v880_v11 = vmul.f32 %v874_v60, %v2649_v36 }
 0x2f4   : > { %v870_v12 = vsub.f32 %v2710_v53, %v868_v0  ;;  %v881_v4 = vmul.f32 %v2639_v29, %v874_v60  ;;  %v882_v18 = vmul.f32 %v2647_v35, %v874_v60  ;;  %v883_v17 = vmul.f32 %v874_v60, %v2662_v47  ;;  %v2739_v35 = vpop.permute.xlu0 %995  ;;  %v2741_v47 = vpop.permute.xlu1 %1000 }
 0x2f5   : > { %v884_v13 = vmul.f32 %v874_v60, %v2669_v52  ;;  %v885_v14 = vmul.f32 %v2659_v45, %v874_v60  ;;  %v886_v20 = vmul.f32 %v2667_v51, %v874_v60  ;;  %v887_v19 = vmul.f32 %v874_v60, %v2682_v63 }
 0x2f6   : > { %v894_v15 = vrot.slane %v870_v12, %v893_v62  ;;  %v889_v31 = vmul.f32 %v2679_v61, %v874_v60  ;;  %v890_v36 = vmul.f32 %v2687_v3, %v874_v60 }
 0x2f8   : > { %v895_v16 = vadd.f32 %v894_v15, %v875_v2  ;;  %v897_v21 = vadd.f32 %v894_v15, %v877_v5  ;;  %v896_v29 = vadd.f32 %v894_v15, %v876_v8  ;;  %v898_v22 = vadd.f32 %v894_v15, %v878_v9  ;;  %v2751_v59 = vpop.permute.xlu0 %1005  ;;  %v2753_v60 = vpop.permute.xlu1 %1010 }
 0x2f9   : > { %v899_v52 = vadd.f32 %v894_v15, %v879_v10  ;;  %v900_v23 = vadd.f32 %v894_v15, %v880_v11  ;;  %v901_v45 = vadd.f32 %v894_v15, %v881_v4  ;;  %v902_v24 = vadd.f32 %v894_v15, %v882_v18 }
 0x2fa   : > { %v911_v51 = vmax.f32 %v895_v16, 0.0  ;;  %v913_v25 = vmax.f32 %v897_v21, 0.0  ;;  %v912_v63 = vmax.f32 %v896_v29, 0.0  ;;  %v914_v26 = vmax.f32 %v898_v22, 0.0 }
 0x2fb   : > { %v915_v27 = vmax.f32 %v899_v52, 0.0  ;;  %v916_v61 = vmax.f32 %v900_v23, 0.0  ;;  %v917_v28 = vmax.f32 %v901_v45, 0.0  ;;  %v918_v3 = vmax.f32 %v902_v24, 0.0 }
 0x2fc   : > { %v1023_v30 = vmul.f32 %v2695_v34, %v911_v51  ;;  %v1025_v32 = vmul.f32 %v2697_v37, %v913_v25  ;;  %v1024_v33 = vmul.f32 %v2699_v42, %v912_v63  ;;  %v1026_v38 = vmul.f32 %v2701_v43, %v914_v26 }
 0x2fd   : > { %v1027_v39 = vmul.f32 %v2703_v48, %v915_v27  ;;  %v1028_v40 = vmul.f32 %v2705_v49, %v916_v61  ;;  %v1029_v41 = vmul.f32 %v2713_v55, %v917_v28  ;;  %v1030_v44 = vmul.f32 %v2715_v56, %v918_v3 }
 0x2fe   : > { %v1039_v46 = vpack.c.bf16 %v1024_v33, %v1023_v30  ;;  %v1040_v54 = vpack.c.bf16 %v1026_v38, %v1025_v32  ;;  %v903_v57 = vadd.f32 %v894_v15, %v883_v17  ;;  %v904_v58 = vadd.f32 %v894_v15, %v884_v13 }
 0x2ff   : > { %v1041_v62 = vpack.c.bf16 %v1028_v40, %v1027_v39  ;;  %v1042_v0 = vpack.c.bf16 %v1030_v44, %v1029_v41  ;;  %v905_v2 = vadd.f32 %v894_v15, %v885_v14  ;;  %v906_v5 = vadd.f32 %v894_v15, %v886_v20 }
 0x300   : > { %v919_v8 = vmax.f32 %v903_v57, 0.0  ;;  %v920_v9 = vmax.f32 %v904_v58, 0.0  ;;  %v907_v10 = vadd.f32 %v894_v15, %v887_v19  ;;  %v908_v11 = vadd.f32 %v894_v15, %v888_v1  ;;  %1807 = vmatprep.mubr.bf16.mxu0 %v1039_v46 }
 0x301   : > { %v921_v12 = vmax.f32 %v905_v2, 0.0  ;;  %v922_v4 = vmax.f32 %v906_v5, 0.0  ;;  %v909_v18 = vadd.f32 %v894_v15, %v889_v31  ;;  %v910_v16 = vadd.f32 %v894_v15, %v890_v36  ;;  %1808 = vmatmul.mubr.bf16.vlgmr.msra.gmra.mrb[16].mxu0 %v1040_v54  ;;  %v2761_v15 = vpop.permute.xlu0 %1015  ;;  %v2763_v36 = vpop.permute.xlu1 %1020 }
 0x302   : > { %v1031_v17 = vmul.f32 %v2721_v6, %v919_v8  ;;  %v1032_v13 = vmul.f32 %v2723_v7, %v920_v9  ;;  %v923_v21 = vmax.f32 %v907_v10, 0.0  ;;  %v924_v29 = vmax.f32 %v908_v11, 0.0  ;;  %1811 = vmatprep.mubr.bf16.mxu0 %v1041_v62 }
 0x303   : > { %v1033_v14 = vmul.f32 %v2739_v35, %v921_v12  ;;  %v1034_v20 = vmul.f32 %v2741_v47, %v922_v4  ;;  %v925_v22 = vmax.f32 %v909_v18, 0.0  ;;  %v926_v19 = vmax.f32 %v910_v16, 0.0 }
 0x304   : > { %v1043_v1 = vpack.c.bf16 %v1032_v13, %v1031_v17  ;;  %v1035_v52 = vmul.f32 %v2751_v59, %v923_v21  ;;  %v1036_v31 = vmul.f32 %v2753_v60, %v924_v29  ;;  %v2282_v63 = vmov 0.0  }
 0x305   : > { %v1044_v23 = vpack.c.bf16 %v1034_v20, %v1033_v14  ;;  %v1037_v45 = vmul.f32 %v2761_v15, %v925_v22  ;;  %v1038_v24 = vmul.f32 %v2763_v36, %v926_v19  ;;  %1823 = vmatprep.subr.bf16.mxu1 %v2282_v63  ;;  %1839 = vmatprep.mubr.msk.bf16.mxu1 %vm2283_vm0, %v2282_v63 }
 0x306   : > { %v1045_v51 = vpack.c.bf16 %v1036_v31, %v1035_v52 }
 0x307   : > { %v1046_v25 = vpack.c.bf16 %v1038_v24, %v1037_v45 }
 0x309   : > { %1812 = vmatmul.mubr.bf16.gmra.mrb[20].mxu0 %v1042_v0 }
 0x30a   : > { %1815 = vmatprep.mubr.bf16.mxu0 %v1043_v1 }
 0x311   : > { %1816 = vmatmul.mubr.bf16.gmra.mrb[24].mxu0 %v1044_v23 }
 0x312   : > { %1819 = vmatprep.mubr.bf16.mxu0 %v1045_v51 }
 0x319   : > { %1820 = vmatmul.mubr.bf16.gmra.mrb[28].mxu0 %v1046_v25 }
 0x3d4   : > { %v2769_v26 = vpop.f32.mrb[16].mxu0 }
 0x3d5   : > { %v2771_v27 = vpop.f32.mrb[17].mxu0  ;;  %v1232_v33 = vmul.f32 %v2769_v26, %v2769_v26 }
 0x3d6   : > { %v2773_v61 = vpop.f32.mrb[18].mxu0  ;;  %v1230_v3 = vmul.f32 %v2771_v27, %v2771_v27 }
 0x3d7   : > { %v2775_v28 = vpop.f32.mrb[19].mxu0  ;;  %v1233_v40 = vmul.f32 %v2773_v61, %v2773_v61 }
 0x3d8   : > { %v1209_v30 = vadd.f32 %v2775_v28, %v2771_v27  ;;  %v1231_v32 = vmul.f32 %v2775_v28, %v2775_v28 }
 0x3da   : > { %v1210_v38 = vadd.f32 %v2769_v26, %v1209_v30  ;;  %v1246_v39 = vadd.f32 %v1231_v32, %v1230_v3 }
 0x3dc   : > { %v1247_v41 = vadd.f32 %v1246_v39, %v1232_v33  ;;  %v2788_v44 = vpop.f32.mrb[20].mxu0  ;;  %v1211_v46 = vadd.f32 %v2773_v61, %v1210_v38 }
 0x3dd   : > { %v2791_v54 = vpop.f32.mrb[21].mxu0  ;;  %v1236_v10 = vmul.f32 %v2788_v44, %v2788_v44 }
 0x3de   : > { %v1212_v57 = vadd.f32 %v1211_v46, %v2791_v54  ;;  %v1234_v58 = vmul.f32 %v2791_v54, %v2791_v54  ;;  %v1248_v62 = vadd.f32 %v1247_v41, %v1233_v40  ;;  %v2796_v0 = vpop.f32.mrb[22].mxu0 }
 0x3df   : > { %v2798_v2 = vpop.f32.mrb[23].mxu0  ;;  %v1237_v4 = vmul.f32 %v2796_v0, %v2796_v0 }
 0x3e0   : > { %v1249_v5 = vadd.f32 %v1248_v62, %v1234_v58  ;;  %v1213_v8 = vadd.f32 %v1212_v57, %v2798_v2  ;;  %v1235_v9 = vmul.f32 %v2798_v2, %v2798_v2 }
 0x3e2   : > { %v1214_v11 = vadd.f32 %v2788_v44, %v1213_v8  ;;  %v1250_v12 = vadd.f32 %v1249_v5, %v1235_v9 }
 0x3e4   : > { %v1251_v18 = vadd.f32 %v1250_v12, %v1236_v10  ;;  %v2808_v16 = vpop.f32.mrb[24].mxu0  ;;  %v1215_v17 = vadd.f32 %v2796_v0, %v1214_v11 }
 0x3e5   : > { %v2811_v13 = vpop.f32.mrb[25].mxu0  ;;  %v1240_v31 = vmul.f32 %v2808_v16, %v2808_v16 }
 0x3e6   : > { %v1216_v21 = vadd.f32 %v1215_v17, %v2811_v13  ;;  %v1238_v29 = vmul.f32 %v2811_v13, %v2811_v13  ;;  %v1252_v14 = vadd.f32 %v1251_v18, %v1237_v4  ;;  %v2816_v20 = vpop.f32.mrb[26].mxu0 }
 0x3e7   : > { %v2818_v22 = vpop.f32.mrb[27].mxu0  ;;  %v1241_v24 = vmul.f32 %v2816_v20, %v2816_v20 }
 0x3e8   : > { %v1253_v19 = vadd.f32 %v1252_v14, %v1238_v29  ;;  %v1217_v1 = vadd.f32 %v1216_v21, %v2818_v22  ;;  %v1239_v52 = vmul.f32 %v2818_v22, %v2818_v22 }
 0x3ea   : > { %v1218_v23 = vadd.f32 %v2808_v16, %v1217_v1  ;;  %v1254_v45 = vadd.f32 %v1253_v19, %v1239_v52 }
 0x3ec   : > { %v1255_v51 = vadd.f32 %v1254_v45, %v1240_v31  ;;  %v1821_v25 = vpop.f32.mrb[28].mxu0  ;;  %v1219_v3 = vadd.f32 %v2816_v20, %v1218_v23 }
 0x3ed   : > { %v1194_v30 = vpop.f32.mrb[29].mxu0  ;;  %v1244_v58 = vmul.f32 %v1821_v25, %v1821_v25 }
 0x3ee   : > { %v1220_v32 = vadd.f32 %v1219_v3, %v1194_v30  ;;  %v1242_v33 = vmul.f32 %v1194_v30, %v1194_v30  ;;  %v1256_v38 = vadd.f32 %v1255_v51, %v1241_v24  ;;  %v1822_v39 = vpop.f32.mrb[30].mxu0 }
 0x3ef   : > { %v1197_v40 = vpop.f32.mrb[31].mxu0  ;;  %v1245_v8 = vmul.f32 %v1822_v39, %v1822_v39 }
 0x3f0   : > { %v1257_v41 = vadd.f32 %v1256_v38, %v1242_v33  ;;  %v1221_v46 = vadd.f32 %v1220_v32, %v1197_v40  ;;  %v1243_v57 = vmul.f32 %v1197_v40, %v1197_v40  ;;  %v1282_v38 = vsub.s32 2, %v2707_v50 }
 0x3f2   : > { %v1222_v62 = vadd.f32 %v1821_v25, %v1221_v46  ;;  %v1258_v5 = vadd.f32 %v1257_v41, %v1243_v57 }
 0x3f4   : > { %v1223_v9 = vadd.f32 %v1822_v39, %v1222_v62  ;;  %v1259_v10 = vadd.f32 %v1258_v5, %v1244_v58  ;;  %v1302_v62 = vsub.s32 3, %v2707_v50 }
 0x3f6   : > { %v1224_v11 = vrot.slane %v1223_v9, 4  ;;  %v1260_v12 = vadd.f32 %v1259_v10, %v1245_v8 }
 0x3f8   : > { %v1225_v4 = vadd.f32 %v1224_v11, %v1223_v9  ;;  %v1261_v18 = vrot.slane %v1260_v12, 4 }
 0x3fa   : > { %v1226_v17 = vrot.slane %v1225_v4, 2  ;;  %v1262_v21 = vadd.f32 %v1261_v18, %v1260_v12 }
 0x3fc   : > { %v1227_v29 = vadd.f32 %v1226_v17, %v1225_v4  ;;  %v1263_v14 = vrot.slane %v1262_v21, 2 }
 0x3fe   : > { %v1228_v19 = vrot.slane %v1227_v29, 1  ;;  %v1264_v1 = vadd.f32 %v1263_v14, %v1262_v21 }
 0x400   : > { %v1229_v52 = vadd.f32 %v1228_v19, %v1227_v29  ;;  %v1265_v31 = vrot.slane %v1264_v1, 1 }
 0x402   : > { %v1266_v23 = vadd.f32 %v1265_v31, %v1264_v1  ;;  %v1267_v45 = vmul.f32 0.0625, %v1229_v52 }
 0x404   : > { %v1268_v24 = vmul.f32 0.0625, %v1266_v23  ;;  %v1269_v51 = vmul.f32 %v1267_v45, %v1267_v45 }
 0x406   : > { %v1270_v3 = vsub.f32 %v1268_v24, %v1269_v51 }
 0x408   : > { %v1271_v32 = vmax.f32 %v1270_v3, 0.0 }
 0x40a   : > { %v1272_v33 = vadd.f32 1e-05, %v1271_v32 }
 0x40c   : > { %1987 = vrsqrt.f32 %v1272_v33 }
 0x416   : > { %v1988_v41 = vpop.eup %1987 }
 0x417   : > { %v1274_v46 = vmul.f32 %v1988_v41, %v2710_v53 }
 0x419   : > { %v1275_v57 = vmul.f32 %v1274_v46, %v1267_v45  ;;  %v1283_v58 = vrot.slane %v1274_v46, %v1282_v38 }
 0x41b   : > { %v1277_v5 = vrot.slane %v1275_v57, 7  ;;  %v1297_v8 = vmul.f32 %v1283_v58, %v1197_v40  ;;  %v1284_v9 = vmul.f32 %v1283_v58, %v2771_v27  ;;  %v1285_v10 = vmul.f32 %v1283_v58, %v2775_v28 }
 0x41c   : > { %v1286_v11 = vmul.f32 %v2769_v26, %v1283_v58  ;;  %v1287_v12 = vmul.f32 %v2773_v61, %v1283_v58  ;;  %v1288_v4 = vmul.f32 %v1283_v58, %v2791_v54  ;;  %v1289_v18 = vmul.f32 %v1283_v58, %v2798_v2 }
 0x41d   : > { %v1279_v17 = vsub.f32 %v2710_v53, %v1277_v5  ;;  %v1290_v21 = vmul.f32 %v2788_v44, %v1283_v58  ;;  %v1291_v50 = vmul.f32 %v2796_v0, %v1283_v58  ;;  %v1292_v40 = vmul.f32 %v1283_v58, %v2811_v13 }
 0x41e   : > { %v1293_v27 = vmul.f32 %v1283_v58, %v2818_v22  ;;  %v1294_v28 = vmul.f32 %v2808_v16, %v1283_v58  ;;  %v1295_v26 = vmul.f32 %v2816_v20, %v1283_v58  ;;  %v1296_v29 = vmul.f32 %v1283_v58, %v1194_v30 }
 0x41f   : > { %v1303_v61 = vrot.slane %v1279_v17, %v1302_v62  ;;  %v1298_v14 = vmul.f32 %v1821_v25, %v1283_v58  ;;  %v1299_v54 = vmul.f32 %v1822_v39, %v1283_v58 }
 0x421   : > { %v1317_v19 = vadd.f32 %v1303_v61, %v1297_v8  ;;  %v1304_v2 = vadd.f32 %v1303_v61, %v1284_v9  ;;  %v1305_v1 = vadd.f32 %v1303_v61, %v1285_v10  ;;  %v1306_v53 = vadd.f32 %v1303_v61, %v1286_v11 }
 0x422   : > { %v1307_v52 = vadd.f32 %v1303_v61, %v1287_v12  ;;  %v1308_v44 = vadd.f32 %v1303_v61, %v1288_v4  ;;  %v1309_v31 = vadd.f32 %v1303_v61, %v1289_v18  ;;  %v1310_v0 = vadd.f32 %v1303_v61, %v1290_v21 }
 0x423   : > { %v1333_v23 = vmax.f32 %v1317_v19, 0.0  ;;  %v1320_v13 = vmax.f32 %v1304_v2, 0.0  ;;  %v1321_v45 = vmax.f32 %v1305_v1, 0.0  ;;  %v1322_v22 = vmax.f32 %v1306_v53, 0.0 }
 0x424   : > { %v1323_v24 = vmax.f32 %v1307_v52, 0.0  ;;  %v1324_v16 = vmax.f32 %v1308_v44, 0.0  ;;  %v1325_v51 = vmax.f32 %v1309_v31, 0.0  ;;  %v1311_v20 = vadd.f32 %v1303_v61, %v1291_v50 }
 0x425   : > { %v1349_v30 = vmul.f32 %v1333_v23, %v2753_v60  ;;  %v1336_v25 = vmul.f32 %v1320_v13, %v2695_v34  ;;  %v1337_v39 = vmul.f32 %v1321_v45, %v2699_v42  ;;  %v1338_v3 = vmul.f32 %v1322_v22, %v2697_v37 }
 0x426   : > { %v1339_v32 = vmul.f32 %v1323_v24, %v2701_v43  ;;  %v1340_v33 = vmul.f32 %v1324_v16, %v2703_v48  ;;  %v1341_v38 = vmul.f32 %v1325_v51, %v2705_v49  ;;  %v1326_v41 = vmax.f32 %v1310_v0, 0.0 }
 0x427   : > { %1381 = vst [vmem:[#allocation13 + $0x68] sm:$0xff] %v1349_v30  ;;  %v1352_v46 = vpack.c.bf16 %v1337_v39, %v1336_v25  ;;  %1368 = vst [vmem:[#allocation13] sm:$0xff] %v1336_v25  ;;  %v1327_v57 = vmax.f32 %v1311_v20, 0.0  ;;  %v1312_v60 = vadd.f32 %v1303_v61, %v1292_v40  ;;  %v1313_v58 = vadd.f32 %v1303_v61, %v1293_v27 }
 0x428   : > { %1369 = vst [vmem:[#allocation13 + $0x8] sm:$0xff] %v1337_v39  ;;  %1370 = vst [vmem:[#allocation13 + $0x10] sm:$0xff] %v1338_v3  ;;  %v1353_v34 = vpack.c.bf16 %v1339_v32, %v1338_v3  ;;  %v1354_v42 = vpack.c.bf16 %v1341_v38, %v1340_v33  ;;  %v1342_v37 = vmul.f32 %v1326_v41, %v2713_v55 }
 0x429   : > { %1371 = vst [vmem:[#allocation13 + $0x18] sm:$0xff] %v1339_v32  ;;  %1372 = vst [vmem:[#allocation13 + $0x20] sm:$0xff] %v1340_v33  ;;  %v1314_v43 = vadd.f32 %v1303_v61, %v1294_v28  ;;  %1824 = vmatpush3.bf16.msra.mxu1 %v1352_v46  ;;  %v1343_v48 = vmul.f32 %v1327_v57, %v2715_v56  ;;  %v1328_v49 = vmax.f32 %v1312_v60, 0.0  ;;  %v1329_v62 = vmax.f32 %v1313_v58, 0.0 }
 0x42a   : > { %1373 = vst [vmem:[#allocation13 + $0x28] sm:$0xff] %v1341_v38  ;;  %1360 = vst [vmem:[#allocation2] sm:$0xff] %v1352_v46  ;;  %v1315_v5 = vadd.f32 %v1303_v61, %v1295_v26  ;;  %1825 = vmatprep.subr.bf16.mxu1 %v2282_v63  ;;  %v1316_v9 = vadd.f32 %v1303_v61, %v1296_v29  ;;  %v1318_v10 = vadd.f32 %v1303_v61, %v1298_v14 }
 0x42b   : > { %1361 = vst [vmem:[#allocation2 + $0x8] sm:$0xff] %v1353_v34  ;;  %1362 = vst [vmem:[#allocation2 + $0x10] sm:$0xff] %v1354_v42  ;;  %v1330_v8 = vmax.f32 %v1314_v43, 0.0  ;;  %v1319_v11 = vadd.f32 %v1303_v61, %v1299_v54  ;;  %v1355_v12 = vpack.c.bf16 %v1343_v48, %v1342_v37  ;;  %v1344_v55 = vmul.f32 %v1328_v49, %v2721_v6 }
 0x42c   : > { %1374 = vst [vmem:[#allocation13 + $0x30] sm:$0xff] %v1342_v37  ;;  %1375 = vst [vmem:[#allocation13 + $0x38] sm:$0xff] %v1343_v48  ;;  %v1345_v4 = vmul.f32 %v1329_v62, %v2723_v7  ;;  %v1331_v18 = vmax.f32 %v1315_v5, 0.0  ;;  %v1332_v17 = vmax.f32 %v1316_v9, 0.0  ;;  %v1334_v21 = vmax.f32 %v1318_v10, 0.0 }
 0x42d   : > { %v1346_v56 = vmul.f32 %v1330_v8, %v2739_v35  ;;  %v1335_v50 = vmax.f32 %v1319_v11, 0.0  ;;  %1826 = vmatpush3.bf16.msra.mxu1 %v1353_v34  ;;  %1363 = vst [vmem:[#allocation2 + $0x18] sm:$0xff] %v1355_v12  ;;  %1376 = vst [vmem:[#allocation13 + $0x40] sm:$0xff] %v1344_v55 }
 0x42e   : > { %v1356_v40 = vpack.c.bf16 %v1345_v4, %v1344_v55  ;;  %1377 = vst [vmem:[#allocation13 + $0x48] sm:$0xff] %v1345_v4  ;;  %v1347_v27 = vmul.f32 %v1331_v18, %v2741_v47  ;;  %1827 = vmatprep.subr.bf16.mxu1 %v2282_v63  ;;  %v1348_v6 = vmul.f32 %v1332_v17, %v2751_v59  ;;  %v1384_v47 = vld [vmem:[#allocation6] sm:$0x1] }
 0x42f   : > { %1378 = vst [vmem:[#allocation13 + $0x50] sm:$0xff] %v1346_v56  ;;  %v1350_v7 = vmul.f32 %v1334_v21, %v2761_v15  ;;  %v1351_v28 = vmul.f32 %v1335_v50, %v2763_v36 }
 0x430   : > { %1364 = vst [vmem:[#allocation2 + $0x20] sm:$0xff] %v1356_v40  ;;  %v1357_v35 = vpack.c.bf16 %v1347_v27, %v1346_v56  ;;  %1379 = vst [vmem:[#allocation13 + $0x58] sm:$0xff] %v1347_v27  ;;  %v1358_v26 = vpack.c.bf16 %v1349_v30, %v1348_v6 }
 0x431   : > { %1380 = vst [vmem:[#allocation13 + $0x60] sm:$0xff] %v1348_v6  ;;  %v1359_v29 = vpack.c.bf16 %v1351_v28, %v1350_v7  ;;  %1382 = vst [vmem:[#allocation13 + $0x70] sm:$0xff] %v1350_v7  ;;  %1828 = vmatpush3.bf16.msra.mxu1 %v1354_v42 }
 0x432   : > { %1383 = vst [vmem:[#allocation13 + $0x78] sm:$0xff] %v1351_v28  ;;  %1365 = vst [vmem:[#allocation2 + $0x28] sm:$0xff] %v1357_v35  ;;  %1829 = vmatprep.subr.bf16.mxu1 %v2282_v63 }
 0x433   : > { %1366 = vst [vmem:[#allocation2 + $0x30] sm:$0xff] %v1358_v26  ;;  %1367 = vst [vmem:[#allocation2 + $0x38] sm:$0xff] %v1359_v29 }
 0x435   : > { %1830 = vmatpush3.bf16.msra.mxu1 %v1355_v12 }
 0x436   : > { %1831 = vmatprep.subr.bf16.mxu1 %v2282_v63 }
 0x439   : > { %1832 = vmatpush3.bf16.msra.mxu1 %v1356_v40 }
 0x43a   : > { %1833 = vmatprep.subr.bf16.mxu1 %v2282_v63 }
 0x43d   : > { %1834 = vmatpush3.bf16.msra.mxu1 %v1357_v35 }
 0x43e   : > { %1835 = vmatprep.subr.bf16.mxu1 %v2282_v63 }
 0x441   : > { %1836 = vmatpush3.bf16.msra.mxu1 %v1358_v26 }
 0x442   : > { %1837 = vmatprep.subr.bf16.mxu1 %v2282_v63 }
 0x445   : > { %1838 = vmatpush3.bf16.msra.mxu1 %v1359_v29 }
 0x448   : > { %1840 = vmatmul.mubr.bf16.vlgmr.msra.gmra.mrb[16].mxu1 %v1384_v47 }
 0x449   : > { %2174 = shalt.err (!%p2171_p13)
}
 0x44a   : > { %s3008_s4 = sld [smem:[#allocation30_spill]]  ;;  %p3009_p6 = pmov %p3007_p2 }
 0x450   : > { %s2175_s12 = scalar_lea.hbm %s3008_s4, 2048 }
 0x451   : > { %p2176_p1 = scmp.ne.s32.totalorder %s3008_s4, %s2175_s12  ;;  %p2181_p5 = scmp.lt.u32.totalorder %s2175_s12, %s3008_s4 }
 0x453   : > { %p2177_p11 = pnand %p2176_p1, %p3009_p6 }
 0x455   : > { %p2178_p3 = pneg %p2177_p11 }
 0x457   : > { %p2183_p10 = pnand %p2181_p5, %p2178_p3 }
 0x459   : > { %2186 = shalt.err (!%p2183_p10)
}
 0x45a   : > { %s2285_s13 = smov 128   ;;  %s3010_s11 = sld [smem:[#allocation25_spill]] }
 0x45b   : > { %s2286_s14 = smov 8   ;;  %p3011_p0 = pmov %p3007_p2 }
 0x45c   : > { %s1665_s15 = sshll.u32 %s2349_s28, 5  ;;  %s1453_s17 = sshll.u32 %s2600_s8, 4  ;;  %s2893_s17 = int_to_ptr.vmem [resolvable:$true] %s1453_s17 }
 0x45d   : > { %1864 = dma.vmem_to_hbm [thread:$0]  (%p3011_p0), %s1438_s20, 2048, %s3008_s4, [#allocation5], %s2285_s13, %s2285_s13, %s2286_s14  }
 0x45e   : > { %s3012_s7 = sld [smem:[#allocation31_spill]]  ;;  %s1427_s30 = scalar_lea.sflag [#allocation15], %s2587_s18 }
 0x45f   : > { %s2187_s21 = scalar_lea.vmem %s2893_s17, 32  ;;  %s2287_s20 = smov [#allocation14]  }
 0x460   : > { %p2188_p2 = scmp.ne.s32.totalorder %s2893_s17, %s2187_s21  ;;  %p3013_p9 = scmp.ne.s32.totalorder %s3010_s11, 0 }
 0x461   : > { %s2191_s29 = sshll.u32 %s2287_s20, 4  ;;  %s2192_s29 = int_to_ptr.vmem [resolvable:$false] %s2191_s29 }
 0x462   : > { %p2189_p4 = pnand %p2188_p2, %p3013_p9  ;;  %s2193_s10 = scalar_lea.vmem %s2192_s29, 64 }
 0x463   : > { %p2194_p12 = scmp.lt.s32.totalorder %s2893_s17, %s2192_s29  ;;  %p2195_p8 = scmp.lt.s32.totalorder %s2193_s10, %s2187_s21 }
 0x464   : > { %s2891_s24 = scalar_lea.hbm %s3012_s7, %s1665_s15  ;;  %p2190_p7 = pneg %p2189_p4 }
 0x465   : > { %p2196_p13 = por %p2195_p8, %p2194_p12 }
 0x467   : > { %p2197_p1 = pnand %p2196_p13, %p2190_p7 }
 0x51b   : > { %v1419_v59 = vpop.f32.mrb[16].mxu1 }
 0x51c   : > { %1425 = vst [vmem:[%s2600_s8] sm:$0x3] %v1419_v59  ;;  %v1841_v15 = vpop.f32.mrb[17].mxu1 }
 0x51d   : > { %v1422_v36 = vpop.f32.mrb[18].mxu1 }
 0x51e   : > { %2200 = shalt.err (!%p2197_p1)
}
 0x51f   : > { %s2201_s18 = scalar_lea.hbm %s2891_s24, 32  ;;  %s2205_s16 = scalar_lea.hbm %s3012_s7, 64 }
 0x520   : > { %p2202_p6 = scmp.ne.s32.totalorder %s2891_s24, %s2201_s18  ;;  %p2206_p5 = scmp.lt.u32.totalorder %s2891_s24, %s3012_s7 }
 0x521   : > { %p2207_p10 = scmp.lt.u32.totalorder %s2205_s16, %s2201_s18  ;;  %p2209_p2 = scmp.lt.u32.totalorder %s2201_s18, %s2891_s24 }
 0x522   : > { %p2203_p11 = pnand %p2202_p6, %p3013_p9 }
 0x523   : > { %p2208_p0 = por %p2207_p10, %p2206_p5 }
 0x524   : > { %p2204_p3 = pneg %p2203_p11 }
 0x525   : > { %p2210_p4 = por %p2209_p2, %p2208_p0 }
 0x527   : > { %p2211_p7 = pnand %p2210_p4, %p2204_p3 }
 0x529   : > { %2214 = shalt.err (!%p2211_p7)
}
 0x52a   : > { %1865 = dma.vmem_to_hbm [thread:$0]  (%p3013_p9), %s2893_s17, 32, %s2891_s24, %s1427_s30   ;;  %v1842_v63 = vpop.f32.mrb[19].mxu1 }
 0x52b   : > { %p3014_p12 = scmp.eq.s32.totalorder %s2349_s28, 1 }
 0x52d   : > { %2248 = dma.done.wait (%p3014_p12), [#allocation5], 2048   ;;  %p3015_p8 = pmov %p3014_p12 }
 0x52f   : > { %2250 = vsyncadd (%p3015_p8), [#allocation5], 4294965248 }
 0x530 PF: > { %s3016_s22 = sld [smem:[#allocation22_spill]]  ;;  %s3017_s13 = sld [smem:[#allocation23_spill]] }
 0x531   : > { %p3019_p1 = scmp.ge.s32.totalorder %s2269_s27, 2 }
 0x536   : > { %s1469_s14 = sand.u32 1, %s3016_s22   ;;  %p3018_p13 = scmp.ne.s32.totalorder %s3017_s13, 0 }
 0x537   : > { %s1470_s1 = scalar_lea.sflag [#allocation15], %s1469_s14 }
 0x538   : > { %p1890_p6 = pnand %p3019_p1, %p3018_p13 }
 0x53a   : > { %2252 = dma.done.wait (!%p1890_p6), %s1470_s1, 32  }
 0x53b   : > { %2254 = vsyncadd (!%p1890_p6), %s1470_s1, 4294967264  ;;  %s3020_s27 = sld [smem:[#allocation24_spill]]  ;;  %s3021_s11 = sld [smem:[#allocation26_spill]] }
 0x53c   : > { %s3022_s24 = smov %s2261_s25  ;;  %s3023_s25 = smov %s2265_s26 }
 0x541   : > { %p22_p9 = scmp.ge.s32.totalorder %s3020_s27, 4   ;;  %s3024_s26 = smov %s3021_s11 }
 0x543   :  { %24 = sbr.rel (!%p22_p9) target bundleno = 13 (0xd), region = 129 }
 0x54a   :  { %1475 = vsyncpa [#allocation4], 1 }
 0x54b   :  { %1477 = vsyncpa [#allocation4 + $0x1], 1 }
 0x54c   :  { %1478 = vsyncpa [#allocation7], 1 }
 0x54d   :  { %1479 = vsyncpa [#allocation10], 1 }
 0x54e   :  { %1480 = vsyncpa [#allocation5], 1 }
 0x54f   :  { %1482 = vsyncpa [#allocation5 + $0x1], 1 }
 0x550   :  { %1483 = vsyncpa [#allocation15], 1 }
 0x551   :  { %1485 = vsyncpa [#allocation15 + $0x1], 1 }

</bundles_post_ra>
